<compile_context>
chip_gen: v7x
topology: tpu7x:2x2x1
jax: 0.10.0
libtpu: 0.0.40
codegen_flags: <defaults>
</compile_context>

<pallas_src>
import math
import functools

import jax
import jax.numpy as jnp
from jax import lax
from jax.experimental import pallas as pl
from jax.experimental.pallas import tpu as pltpu


# ---------------------------------------------------------------------------
# Model hyper-parameters (small but structurally identical to the module)
# ---------------------------------------------------------------------------
B = 2          # batch
N = 8          # sequence length (nq == nk)
D_MODEL = 128
H = 4          # heads
D_K = 32
D_V = 32
D_FF = 256
LN_EPS = 1e-5


def _layer_norm_f32(x, g, b_):
    mu = jnp.mean(x, axis=-1, keepdims=True)
    var = jnp.mean((x - mu) * (x - mu), axis=-1, keepdims=True)
    return (x - mu) * lax.rsqrt(var + LN_EPS) * g + b_


# ---------------------------------------------------------------------------
# Pallas kernel: whole layer fused, one grid step for the whole batch.
# ---------------------------------------------------------------------------
def _encoder_layer_kernel(
    # activations, flattened to (B*N, D_MODEL), f32
    q_in, k_in, v_in,
    # attention projections: weights (in, out) bf16, biases (1, out) f32.
    # wq/bq already carry the folded 1/sqrt(d_k) scale.
    wq, bq, wk, bk, wv, bv,
    # output projection pre-split per head: (H, d_v, D_MODEL) bf16, bias (1, D) f32
    wo_h, bo,
    # layer norm 1 (f32)
    ln1_g, ln1_b,
    # feed forward (weights bf16, biases f32)
    w1, b1, w2, b2,
    # layer norm 2 (f32)
    ln2_g, ln2_b,
    # output (B*N, D_MODEL) f32
    out_ref,
    *, batch, n, h, d_k, d_v,
):
    f32 = jnp.float32
    bf16 = jnp.bfloat16

    xq = q_in[...]                       # (B*N, D) f32
    xk = k_in[...]
    xv = v_in[...]

    def mxu(a_f32, w_ref):
        # bf16 operands on the MXU, f32 accumulation.
        return jnp.dot(a_f32.astype(bf16), w_ref[...], preferred_element_type=f32)

    # --- Q/K/V projections on the full (B*N, D) slab ---
    q = mxu(xq, wq) + bq[...]            # (B*N, h*d_k), scale already folded in
    k = mxu(xk, wk) + bk[...]            # (B*N, h*d_k)
    v = mxu(xv, wv) + bv[...]            # (B*N, h*d_v)

    contract_last = (((1,), (1,)), ((), ()))   # q_h @ k_h^T without explicit .T

    # --- per-batch, per-head attention with accumulated output projection ---
    attn_rows = []
    for b_i in range(batch):
        r0 = b_i * n
        qb = q[r0:r0 + n]                # (N, h*d_k) -- static sublane slice
        kb = k[r0:r0 + n]
        vb = v[r0:r0 + n]
        acc = jnp.zeros((n, out_ref.shape[-1]), f32)   # (N, D) accumulator
        for head in range(h):
            qh = qb[:, head * d_k:(head + 1) * d_k].astype(bf16)   # (N, d_k)
            kh = kb[:, head * d_k:(head + 1) * d_k].astype(bf16)   # (N, d_k)
            vh = vb[:, head * d_v:(head + 1) * d_v].astype(bf16)   # (N, d_v)

            att = lax.dot_general(qh, kh, contract_last,
                                  preferred_element_type=f32)       # (N, N)
            m = jnp.max(att, axis=-1, keepdims=True)
            e = jnp.exp(att - m)
            inv = pl.reciprocal(jnp.sum(e, axis=-1, keepdims=True), approx=True)
            p = (e * inv).astype(bf16)                               # (N, N)

            ov = jnp.dot(p, vh, preferred_element_type=f32)          # (N, d_v)
            # accumulate the per-head slice of the output projection:
            # keeps the matmul output 128 lanes wide, no concatenate needed.
            acc = acc + jnp.dot(ov.astype(bf16), wo_h[head],
                                preferred_element_type=f32)          # (N, D)
        attn_rows.append(acc)
    attn = jnp.concatenate(attn_rows, axis=0) + bo[...]              # (B*N, D)

    # --- residual + LayerNorm 1 (dropout == identity) ---
    y = _layer_norm_f32(xq + attn, ln1_g[...], ln1_b[...])

    # --- position-wise feed forward on the full slab ---
    ff = mxu(y, w1) + b1[...]            # (B*N, D_FF)
    ff = jnp.maximum(ff, 0.0)
    ff = mxu(ff, w2) + b2[...]           # (B*N, D)

    # --- residual + LayerNorm 2 ---
    z = _layer_norm_f32(y + ff, ln2_g[...], ln2_b[...])
    out_ref[...] = z.astype(out_ref.dtype)


# ---------------------------------------------------------------------------
# Wrapper: flatten batch, single grid step, full-array blocks.
# ---------------------------------------------------------------------------
def encoder_layer(queries, keys, values, kparams):
    b, n, d = queries.shape
    qf = queries.reshape(b * n, d)
    kf = keys.reshape(b * n, d)
    vf = values.reshape(b * n, d)

    flat = [
        kparams["wq"], kparams["bq"], kparams["wk"], kparams["bk"],
        kparams["wv"], kparams["bv"], kparams["wo_h"], kparams["bo"],
        kparams["ln1_g"], kparams["ln1_b"],
        kparams["w1"], kparams["b1"], kparams["w2"], kparams["b2"],
        kparams["ln2_g"], kparams["ln2_b"],
    ]

    def full_spec(shape):
        nd = len(shape)
        return pl.BlockSpec(shape, lambda i, _nd=nd: (0,) * _nd)

    act_spec = full_spec((b * n, d))
    in_specs = [act_spec, act_spec, act_spec] + [full_spec(p.shape) for p in flat]

    kernel = functools.partial(_encoder_layer_kernel,
                               batch=b, n=n, h=H, d_k=D_K, d_v=D_V)

    out = pl.pallas_call(
        kernel,
        out_shape=jax.ShapeDtypeStruct((b * n, d), jnp.float32),
        grid=(1,),
        in_specs=in_specs,
        out_specs=full_spec((b * n, d)),
        compiler_params=pltpu.CompilerParams(dimension_semantics=("arbitrary",)),
    )(qf, kf, vf, *flat)
    return out.reshape(b, n, d)


# ---------------------------------------------------------------------------
# Parameter init (mirrors nn.Linear xavier_uniform + zero bias, LayerNorm
# weight=1 bias=0).  Linear weights stored pre-transposed as (in, out).
# ---------------------------------------------------------------------------
def _xavier_uniform(key, fan_in, fan_out):
    bound = math.sqrt(6.0 / (fan_in + fan_out))
    w = jax.random.uniform(key, (fan_out, fan_in), jnp.float32, -bound, bound)
    return w.T


def init_params(key):
    keys = jax.random.split(key, 6)
    p = {}
    p["wq"] = _xavier_uniform(keys[0], D_MODEL, H * D_K)
    p["bq"] = jnp.zeros((1, H * D_K), jnp.float32)
    p["wk"] = _xavier_uniform(keys[1], D_MODEL, H * D_K)
    p["bk"] = jnp.zeros((1, H * D_K), jnp.float32)
    p["wv"] = _xavier_uniform(keys[2], D_MODEL, H * D_V)
    p["bv"] = jnp.zeros((1, H * D_V), jnp.float32)
    p["wo"] = _xavier_uniform(keys[3], H * D_V, D_MODEL)
    p["bo"] = jnp.zeros((1, D_MODEL), jnp.float32)
    p["ln1_g"] = jnp.ones((1, D_MODEL), jnp.float32)
    p["ln1_b"] = jnp.zeros((1, D_MODEL), jnp.float32)
    p["w1"] = _xavier_uniform(keys[4], D_MODEL, D_FF)
    p["b1"] = jnp.zeros((1, D_FF), jnp.float32)
    p["w2"] = _xavier_uniform(keys[5], D_FF, D_MODEL)
    p["b2"] = jnp.zeros((1, D_MODEL), jnp.float32)
    p["ln2_g"] = jnp.ones((1, D_MODEL), jnp.float32)
    p["ln2_b"] = jnp.zeros((1, D_MODEL), jnp.float32)
    return p


def prepare_kernel_params(p):
    """One-time, host-side prep of kernel-ready params:
    fold 1/sqrt(d_k) into wq/bq, cast MXU weights to bf16, split wo per head."""
    bf16 = jnp.bfloat16
    s = 1.0 / math.sqrt(D_K)
    return {
        "wq": (p["wq"] * s).astype(bf16),
        "bq": p["bq"] * s,
        "wk": p["wk"].astype(bf16),
        "bk": p["bk"],
        "wv": p["wv"].astype(bf16),
        "bv": p["bv"],
        "wo_h": p["wo"].reshape(H, D_V, D_MODEL).astype(bf16),
        "bo": p["bo"],
        "ln1_g": p["ln1_g"], "ln1_b": p["ln1_b"],
        "w1": p["w1"].astype(bf16), "b1": p["b1"],
        "w2": p["w2"].astype(bf16), "b2": p["b2"],
        "ln2_g": p["ln2_g"], "ln2_b": p["ln2_b"],
    }


# ---------------------------------------------------------------------------
# Pure-JAX f32 reference (module semantics) for a sanity check.
# ---------------------------------------------------------------------------
def encoder_layer_ref(q, k, v, p):
    def ln(x, g, b_):
        mu = jnp.mean(x, -1, keepdims=True)
        var = jnp.mean((x - mu) ** 2, -1, keepdims=True)
        return (x - mu) * lax.rsqrt(var + LN_EPS) * g + b_

    qp = q @ p["wq"] + p["bq"]
    kp = k @ p["wk"] + p["bk"]
    vp = v @ p["wv"] + p["bv"]
    b_s, nq, _ = q.shape
    qh = qp.reshape(b_s, nq, H, D_K).transpose(0, 2, 1, 3)
    kh = kp.reshape(b_s, nq, H, D_K).transpose(0, 2, 1, 3)
    vh = vp.reshape(b_s, nq, H, D_V).transpose(0, 2, 1, 3)
    att = jnp.einsum("bhqd,bhkd->bhqk", qh, kh) / math.sqrt(D_K)
    att = jax.nn.softmax(att, -1)
    out = jnp.einsum("bhqk,bhkd->bhqd", att, vh).transpose(0, 2, 1, 3).reshape(b_s, nq, H * D_V)
    out = out @ p["wo"] + p["bo"]
    y = ln(q + out, p["ln1_g"], p["ln1_b"])
    ff = jnp.maximum(y @ p["w1"] + p["b1"], 0.0) @ p["w2"] + p["b2"]
    return ln(y + ff, p["ln2_g"], p["ln2_b"])


if __name__ == "__main__":
    key = jax.random.PRNGKey(0)
    kq, kk, kv, kparam = jax.random.split(key, 4)
    queries = jax.random.normal(kq, (B, N, D_MODEL), jnp.float32)
    keys_in = jax.random.normal(kk, (B, N, D_MODEL), jnp.float32)
    values = jax.random.normal(kv, (B, N, D_MODEL), jnp.float32)

    params = init_params(kparam)            # f32, module-equivalent (for reference)
    kparams = prepare_kernel_params(params)  # kernel-ready (scale folded, bf16 weights)

    out = encoder_layer(queries, keys_in, values, kparams)
    out = jax.block_until_ready(out)

    ref = encoder_layer_ref(queries, keys_in, values, params)
    assert out.shape == (B, N, D_MODEL)
    # bf16 MXU operands + approx-reciprocal softmax vs an all-f32 reference:
    # expected max-abs error ~1e-2; 5e-2 is a safe bound at this scale.
    err = float(jnp.max(jnp.abs(out - ref)))
    assert err < 5e-2, f"mismatch vs pure-JAX reference: {err}"

    # TODO(synk): attention_mask / attention_weights paths (None in this test) are
    # not wired into the kernel.
    print("KERNEL_OK")
</pallas_src>

<mosaic_0001>
module attributes {stable_mosaic.version = 11 : i64} {
  func.func @_encoder_layer_kernel(%arg0: i32, %arg1: memref<16x128xf32, #tpu.memory_space<vmem>>, %arg2: memref<16x128xf32, #tpu.memory_space<vmem>>, %arg3: memref<16x128xf32, #tpu.memory_space<vmem>>, %arg4: memref<128x128xbf16, #tpu.memory_space<vmem>>, %arg5: memref<1x128xf32, #tpu.memory_space<vmem>>, %arg6: memref<128x128xbf16, #tpu.memory_space<vmem>>, %arg7: memref<1x128xf32, #tpu.memory_space<vmem>>, %arg8: memref<128x128xbf16, #tpu.memory_space<vmem>>, %arg9: memref<1x128xf32, #tpu.memory_space<vmem>>, %arg10: memref<4x32x128xbf16, #tpu.memory_space<vmem>>, %arg11: memref<1x128xf32, #tpu.memory_space<vmem>>, %arg12: memref<1x128xf32, #tpu.memory_space<vmem>>, %arg13: memref<1x128xf32, #tpu.memory_space<vmem>>, %arg14: memref<128x256xbf16, #tpu.memory_space<vmem>>, %arg15: memref<1x256xf32, #tpu.memory_space<vmem>>, %arg16: memref<256x128xbf16, #tpu.memory_space<vmem>>, %arg17: memref<1x128xf32, #tpu.memory_space<vmem>>, %arg18: memref<1x128xf32, #tpu.memory_space<vmem>>, %arg19: memref<1x128xf32, #tpu.memory_space<vmem>>, %arg20: memref<16x128xf32, #tpu.memory_space<vmem>>) attributes {dimension_semantics = [#tpu.dimension_semantics<arbitrary>], iteration_bounds = array<i64: 1>, scalar_prefetch = 0 : i64, scratch_operands = 0 : i64, tpu.core_type = #tpu.core_type<tc>, window_params = [{pipeline_mode = #tpu.pipeline_mode<synchronous>, transform_indices = @transform_0, window_bounds = array<i64: 16, 128>}, {pipeline_mode = #tpu.pipeline_mode<synchronous>, transform_indices = @transform_1, window_bounds = array<i64: 16, 128>}, {pipeline_mode = #tpu.pipeline_mode<synchronous>, transform_indices = @transform_2, window_bounds = array<i64: 16, 128>}, {pipeline_mode = #tpu.pipeline_mode<synchronous>, transform_indices = @transform_3, window_bounds = array<i64: 128, 128>}, {pipeline_mode = #tpu.pipeline_mode<synchronous>, transform_indices = @transform_4, window_bounds = array<i64: 1, 128>}, {pipeline_mode = #tpu.pipeline_mode<synchronous>, transform_indices = @transform_5, window_bounds = array<i64: 128, 128>}, {pipeline_mode = #tpu.pipeline_mode<synchronous>, transform_indices = @transform_6, window_bounds = array<i64: 1, 128>}, {pipeline_mode = #tpu.pipeline_mode<synchronous>, transform_indices = @transform_7, window_bounds = array<i64: 128, 128>}, {pipeline_mode = #tpu.pipeline_mode<synchronous>, transform_indices = @transform_8, window_bounds = array<i64: 1, 128>}, {pipeline_mode = #tpu.pipeline_mode<synchronous>, transform_indices = @transform_9, window_bounds = array<i64: 4, 32, 128>}, {pipeline_mode = #tpu.pipeline_mode<synchronous>, transform_indices = @transform_10, window_bounds = array<i64: 1, 128>}, {pipeline_mode = #tpu.pipeline_mode<synchronous>, transform_indices = @transform_11, window_bounds = array<i64: 1, 128>}, {pipeline_mode = #tpu.pipeline_mode<synchronous>, transform_indices = @transform_12, window_bounds = array<i64: 1, 128>}, {pipeline_mode = #tpu.pipeline_mode<synchronous>, transform_indices = @transform_13, window_bounds = array<i64: 128, 256>}, {pipeline_mode = #tpu.pipeline_mode<synchronous>, transform_indices = @transform_14, window_bounds = array<i64: 1, 256>}, {pipeline_mode = #tpu.pipeline_mode<synchronous>, transform_indices = @transform_15, window_bounds = array<i64: 256, 128>}, {pipeline_mode = #tpu.pipeline_mode<synchronous>, transform_indices = @transform_16, window_bounds = array<i64: 1, 128>}, {pipeline_mode = #tpu.pipeline_mode<synchronous>, transform_indices = @transform_17, window_bounds = array<i64: 1, 128>}, {pipeline_mode = #tpu.pipeline_mode<synchronous>, transform_indices = @transform_18, window_bounds = array<i64: 1, 128>}, {pipeline_mode = #tpu.pipeline_mode<synchronous>, transform_indices = @transform_19, window_bounds = array<i64: 16, 128>}]} {
    %c0 = arith.constant 0 : index
    %c0_0 = arith.constant 0 : index
    %0 = vector.load %arg1[%c0, %c0_0] : memref<16x128xf32, #tpu.memory_space<vmem>>, vector<16x128xf32>
    %c0_1 = arith.constant 0 : index
    %c0_2 = arith.constant 0 : index
    %1 = vector.load %arg2[%c0_1, %c0_2] : memref<16x128xf32, #tpu.memory_space<vmem>>, vector<16x128xf32>
    %c0_3 = arith.constant 0 : index
    %c0_4 = arith.constant 0 : index
    %2 = vector.load %arg3[%c0_3, %c0_4] : memref<16x128xf32, #tpu.memory_space<vmem>>, vector<16x128xf32>
    %3 = arith.truncf %0 : vector<16x128xf32> to vector<16x128xbf16>
    %c0_5 = arith.constant 0 : index
    %c0_6 = arith.constant 0 : index
    %4 = vector.load %arg4[%c0_5, %c0_6] : memref<128x128xbf16, #tpu.memory_space<vmem>>, vector<128x128xbf16>
    %cst = arith.constant dense<0.000000e+00> : vector<16x128xf32>
    %5 = tpu.matmul %3, %4, %cst {dimension_numbers = #tpu.dot_dimension_numbers<[1], [0], [0], [1], [0, 0, 1, 1], [], []>} : vector<16x128xbf16>, vector<128x128xbf16>, vector<16x128xf32> -> vector<16x128xf32>
    %c0_7 = arith.constant 0 : index
    %c0_8 = arith.constant 0 : index
    %6 = vector.load %arg5[%c0_7, %c0_8] : memref<1x128xf32, #tpu.memory_space<vmem>>, vector<1x128xf32>
    %7 = vector.broadcast %6 : vector<1x128xf32> to vector<16x128xf32>
    %8 = arith.addf %5, %7 : vector<16x128xf32>
    %9 = arith.truncf %1 : vector<16x128xf32> to vector<16x128xbf16>
    %c0_9 = arith.constant 0 : index
    %c0_10 = arith.constant 0 : index
    %10 = vector.load %arg6[%c0_9, %c0_10] : memref<128x128xbf16, #tpu.memory_space<vmem>>, vector<128x128xbf16>
    %cst_11 = arith.constant dense<0.000000e+00> : vector<16x128xf32>
    %11 = tpu.matmul %9, %10, %cst_11 {dimension_numbers = #tpu.dot_dimension_numbers<[1], [0], [0], [1], [0, 0, 1, 1], [], []>} : vector<16x128xbf16>, vector<128x128xbf16>, vector<16x128xf32> -> vector<16x128xf32>
    %c0_12 = arith.constant 0 : index
    %c0_13 = arith.constant 0 : index
    %12 = vector.load %arg7[%c0_12, %c0_13] : memref<1x128xf32, #tpu.memory_space<vmem>>, vector<1x128xf32>
    %13 = vector.broadcast %12 : vector<1x128xf32> to vector<16x128xf32>
    %14 = arith.addf %11, %13 : vector<16x128xf32>
    %15 = arith.truncf %2 : vector<16x128xf32> to vector<16x128xbf16>
    %c0_14 = arith.constant 0 : index
    %c0_15 = arith.constant 0 : index
    %16 = vector.load %arg8[%c0_14, %c0_15] : memref<128x128xbf16, #tpu.memory_space<vmem>>, vector<128x128xbf16>
    %cst_16 = arith.constant dense<0.000000e+00> : vector<16x128xf32>
    %17 = tpu.matmul %15, %16, %cst_16 {dimension_numbers = #tpu.dot_dimension_numbers<[1], [0], [0], [1], [0, 0, 1, 1], [], []>} : vector<16x128xbf16>, vector<128x128xbf16>, vector<16x128xf32> -> vector<16x128xf32>
    %c0_17 = arith.constant 0 : index
    %c0_18 = arith.constant 0 : index
    %18 = vector.load %arg9[%c0_17, %c0_18] : memref<1x128xf32, #tpu.memory_space<vmem>>, vector<1x128xf32>
    %19 = vector.broadcast %18 : vector<1x128xf32> to vector<16x128xf32>
    %20 = arith.addf %17, %19 : vector<16x128xf32>
    %21 = vector.extract_strided_slice %8 {offsets = [0, 0], sizes = [8, 128], strides = [1, 1]} : vector<16x128xf32> to vector<8x128xf32>
    %22 = vector.extract_strided_slice %14 {offsets = [0, 0], sizes = [8, 128], strides = [1, 1]} : vector<16x128xf32> to vector<8x128xf32>
    %23 = vector.extract_strided_slice %20 {offsets = [0, 0], sizes = [8, 128], strides = [1, 1]} : vector<16x128xf32> to vector<8x128xf32>
    %cst_19 = arith.constant 0.000000e+00 : f32
    %24 = vector.broadcast %cst_19 : f32 to vector<8x128xf32>
    %25 = vector.extract_strided_slice %21 {offsets = [0, 0], sizes = [8, 32], strides = [1, 1]} : vector<8x128xf32> to vector<8x32xf32>
    %26 = arith.truncf %25 : vector<8x32xf32> to vector<8x32xbf16>
    %27 = vector.extract_strided_slice %22 {offsets = [0, 0], sizes = [8, 32], strides = [1, 1]} : vector<8x128xf32> to vector<8x32xf32>
    %28 = arith.truncf %27 : vector<8x32xf32> to vector<8x32xbf16>
    %29 = vector.extract_strided_slice %23 {offsets = [0, 0], sizes = [8, 32], strides = [1, 1]} : vector<8x128xf32> to vector<8x32xf32>
    %30 = arith.truncf %29 : vector<8x32xf32> to vector<8x32xbf16>
    %cst_20 = arith.constant dense<0.000000e+00> : vector<8x8xf32>
    %31 = tpu.matmul %26, %28, %cst_20 {dimension_numbers = #tpu.dot_dimension_numbers<[1], [1], [0], [0], [0, 0, 1, 0], [], []>} : vector<8x32xbf16>, vector<8x32xbf16>, vector<8x8xf32> -> vector<8x8xf32>
    %cst_21 = arith.constant dense<0xFF800000> : vector<8xf32>
    %32 = vector.multi_reduction <maximumf>, %31, %cst_21 [1] : vector<8x8xf32> to vector<8xf32>
    %33 = vector.shape_cast %32 : vector<8xf32> to vector<8x1xf32>
    %34 = vector.broadcast %33 : vector<8x1xf32> to vector<8x8xf32>
    %35 = arith.subf %31, %34 : vector<8x8xf32>
    %36 = math.exp %35 : vector<8x8xf32>
    %cst_22 = arith.constant dense<0.000000e+00> : vector<8xf32>
    %37 = vector.multi_reduction <add>, %36, %cst_22 [1] : vector<8x8xf32> to vector<8xf32>
    %38 = vector.shape_cast %37 : vector<8xf32> to vector<8x1xf32>
    %39 = tpu.reciprocal %38 {approx = true} : vector<8x1xf32> -> vector<8x1xf32>
    %40 = vector.broadcast %39 : vector<8x1xf32> to vector<8x8xf32>
    %41 = arith.mulf %36, %40 : vector<8x8xf32>
    %42 = arith.truncf %41 : vector<8x8xf32> to vector<8x8xbf16>
    %cst_23 = arith.constant dense<0.000000e+00> : vector<8x32xf32>
    %43 = tpu.matmul %42, %30, %cst_23 {dimension_numbers = #tpu.dot_dimension_numbers<[1], [0], [0], [1], [0, 0, 1, 1], [], []>} : vector<8x8xbf16>, vector<8x32xbf16>, vector<8x32xf32> -> vector<8x32xf32>
    %44 = arith.truncf %43 : vector<8x32xf32> to vector<8x32xbf16>
    %c0_24 = arith.constant 0 : index
    %c0_25 = arith.constant 0 : index
    %c0_26 = arith.constant 0 : index
    %45 = vector.load %arg10[%c0_24, %c0_25, %c0_26] : memref<4x32x128xbf16, #tpu.memory_space<vmem>>, vector<1x32x128xbf16>
    %46 = vector.shape_cast %45 : vector<1x32x128xbf16> to vector<32x128xbf16>
    %cst_27 = arith.constant dense<0.000000e+00> : vector<8x128xf32>
    %47 = tpu.matmul %44, %46, %cst_27 {dimension_numbers = #tpu.dot_dimension_numbers<[1], [0], [0], [1], [0, 0, 1, 1], [], []>} : vector<8x32xbf16>, vector<32x128xbf16>, vector<8x128xf32> -> vector<8x128xf32>
    %48 = arith.addf %24, %47 : vector<8x128xf32>
    %49 = vector.extract_strided_slice %21 {offsets = [0, 32], sizes = [8, 32], strides = [1, 1]} : vector<8x128xf32> to vector<8x32xf32>
    %50 = arith.truncf %49 : vector<8x32xf32> to vector<8x32xbf16>
    %51 = vector.extract_strided_slice %22 {offsets = [0, 32], sizes = [8, 32], strides = [1, 1]} : vector<8x128xf32> to vector<8x32xf32>
    %52 = arith.truncf %51 : vector<8x32xf32> to vector<8x32xbf16>
    %53 = vector.extract_strided_slice %23 {offsets = [0, 32], sizes = [8, 32], strides = [1, 1]} : vector<8x128xf32> to vector<8x32xf32>
    %54 = arith.truncf %53 : vector<8x32xf32> to vector<8x32xbf16>
    %cst_28 = arith.constant dense<0.000000e+00> : vector<8x8xf32>
    %55 = tpu.matmul %50, %52, %cst_28 {dimension_numbers = #tpu.dot_dimension_numbers<[1], [1], [0], [0], [0, 0, 1, 0], [], []>} : vector<8x32xbf16>, vector<8x32xbf16>, vector<8x8xf32> -> vector<8x8xf32>
    %cst_29 = arith.constant dense<0xFF800000> : vector<8xf32>
    %56 = vector.multi_reduction <maximumf>, %55, %cst_29 [1] : vector<8x8xf32> to vector<8xf32>
    %57 = vector.shape_cast %56 : vector<8xf32> to vector<8x1xf32>
    %58 = vector.broadcast %57 : vector<8x1xf32> to vector<8x8xf32>
    %59 = arith.subf %55, %58 : vector<8x8xf32>
    %60 = math.exp %59 : vector<8x8xf32>
    %cst_30 = arith.constant dense<0.000000e+00> : vector<8xf32>
    %61 = vector.multi_reduction <add>, %60, %cst_30 [1] : vector<8x8xf32> to vector<8xf32>
    %62 = vector.shape_cast %61 : vector<8xf32> to vector<8x1xf32>
    %63 = tpu.reciprocal %62 {approx = true} : vector<8x1xf32> -> vector<8x1xf32>
    %64 = vector.broadcast %63 : vector<8x1xf32> to vector<8x8xf32>
    %65 = arith.mulf %60, %64 : vector<8x8xf32>
    %66 = arith.truncf %65 : vector<8x8xf32> to vector<8x8xbf16>
    %cst_31 = arith.constant dense<0.000000e+00> : vector<8x32xf32>
    %67 = tpu.matmul %66, %54, %cst_31 {dimension_numbers = #tpu.dot_dimension_numbers<[1], [0], [0], [1], [0, 0, 1, 1], [], []>} : vector<8x8xbf16>, vector<8x32xbf16>, vector<8x32xf32> -> vector<8x32xf32>
    %68 = arith.truncf %67 : vector<8x32xf32> to vector<8x32xbf16>
    %c1 = arith.constant 1 : index
    %c0_32 = arith.constant 0 : index
    %c0_33 = arith.constant 0 : index
    %69 = vector.load %arg10[%c1, %c0_32, %c0_33] : memref<4x32x128xbf16, #tpu.memory_space<vmem>>, vector<1x32x128xbf16>
    %70 = vector.shape_cast %69 : vector<1x32x128xbf16> to vector<32x128xbf16>
    %cst_34 = arith.constant dense<0.000000e+00> : vector<8x128xf32>
    %71 = tpu.matmul %68, %70, %cst_34 {dimension_numbers = #tpu.dot_dimension_numbers<[1], [0], [0], [1], [0, 0, 1, 1], [], []>} : vector<8x32xbf16>, vector<32x128xbf16>, vector<8x128xf32> -> vector<8x128xf32>
    %72 = arith.addf %48, %71 : vector<8x128xf32>
    %73 = vector.extract_strided_slice %21 {offsets = [0, 64], sizes = [8, 32], strides = [1, 1]} : vector<8x128xf32> to vector<8x32xf32>
    %74 = arith.truncf %73 : vector<8x32xf32> to vector<8x32xbf16>
    %75 = vector.extract_strided_slice %22 {offsets = [0, 64], sizes = [8, 32], strides = [1, 1]} : vector<8x128xf32> to vector<8x32xf32>
    %76 = arith.truncf %75 : vector<8x32xf32> to vector<8x32xbf16>
    %77 = vector.extract_strided_slice %23 {offsets = [0, 64], sizes = [8, 32], strides = [1, 1]} : vector<8x128xf32> to vector<8x32xf32>
    %78 = arith.truncf %77 : vector<8x32xf32> to vector<8x32xbf16>
    %cst_35 = arith.constant dense<0.000000e+00> : vector<8x8xf32>
    %79 = tpu.matmul %74, %76, %cst_35 {dimension_numbers = #tpu.dot_dimension_numbers<[1], [1], [0], [0], [0, 0, 1, 0], [], []>} : vector<8x32xbf16>, vector<8x32xbf16>, vector<8x8xf32> -> vector<8x8xf32>
    %cst_36 = arith.constant dense<0xFF800000> : vector<8xf32>
    %80 = vector.multi_reduction <maximumf>, %79, %cst_36 [1] : vector<8x8xf32> to vector<8xf32>
    %81 = vector.shape_cast %80 : vector<8xf32> to vector<8x1xf32>
    %82 = vector.broadcast %81 : vector<8x1xf32> to vector<8x8xf32>
    %83 = arith.subf %79, %82 : vector<8x8xf32>
    %84 = math.exp %83 : vector<8x8xf32>
    %cst_37 = arith.constant dense<0.000000e+00> : vector<8xf32>
    %85 = vector.multi_reduction <add>, %84, %cst_37 [1] : vector<8x8xf32> to vector<8xf32>
    %86 = vector.shape_cast %85 : vector<8xf32> to vector<8x1xf32>
    %87 = tpu.reciprocal %86 {approx = true} : vector<8x1xf32> -> vector<8x1xf32>
    %88 = vector.broadcast %87 : vector<8x1xf32> to vector<8x8xf32>
    %89 = arith.mulf %84, %88 : vector<8x8xf32>
    %90 = arith.truncf %89 : vector<8x8xf32> to vector<8x8xbf16>
    %cst_38 = arith.constant dense<0.000000e+00> : vector<8x32xf32>
    %91 = tpu.matmul %90, %78, %cst_38 {dimension_numbers = #tpu.dot_dimension_numbers<[1], [0], [0], [1], [0, 0, 1, 1], [], []>} : vector<8x8xbf16>, vector<8x32xbf16>, vector<8x32xf32> -> vector<8x32xf32>
    %92 = arith.truncf %91 : vector<8x32xf32> to vector<8x32xbf16>
    %c2 = arith.constant 2 : index
    %c0_39 = arith.constant 0 : index
    %c0_40 = arith.constant 0 : index
    %93 = vector.load %arg10[%c2, %c0_39, %c0_40] : memref<4x32x128xbf16, #tpu.memory_space<vmem>>, vector<1x32x128xbf16>
    %94 = vector.shape_cast %93 : vector<1x32x128xbf16> to vector<32x128xbf16>
    %cst_41 = arith.constant dense<0.000000e+00> : vector<8x128xf32>
    %95 = tpu.matmul %92, %94, %cst_41 {dimension_numbers = #tpu.dot_dimension_numbers<[1], [0], [0], [1], [0, 0, 1, 1], [], []>} : vector<8x32xbf16>, vector<32x128xbf16>, vector<8x128xf32> -> vector<8x128xf32>
    %96 = arith.addf %72, %95 : vector<8x128xf32>
    %97 = vector.extract_strided_slice %21 {offsets = [0, 96], sizes = [8, 32], strides = [1, 1]} : vector<8x128xf32> to vector<8x32xf32>
    %98 = arith.truncf %97 : vector<8x32xf32> to vector<8x32xbf16>
    %99 = vector.extract_strided_slice %22 {offsets = [0, 96], sizes = [8, 32], strides = [1, 1]} : vector<8x128xf32> to vector<8x32xf32>
    %100 = arith.truncf %99 : vector<8x32xf32> to vector<8x32xbf16>
    %101 = vector.extract_strided_slice %23 {offsets = [0, 96], sizes = [8, 32], strides = [1, 1]} : vector<8x128xf32> to vector<8x32xf32>
    %102 = arith.truncf %101 : vector<8x32xf32> to vector<8x32xbf16>
    %cst_42 = arith.constant dense<0.000000e+00> : vector<8x8xf32>
    %103 = tpu.matmul %98, %100, %cst_42 {dimension_numbers = #tpu.dot_dimension_numbers<[1], [1], [0], [0], [0, 0, 1, 0], [], []>} : vector<8x32xbf16>, vector<8x32xbf16>, vector<8x8xf32> -> vector<8x8xf32>
    %cst_43 = arith.constant dense<0xFF800000> : vector<8xf32>
    %104 = vector.multi_reduction <maximumf>, %103, %cst_43 [1] : vector<8x8xf32> to vector<8xf32>
    %105 = vector.shape_cast %104 : vector<8xf32> to vector<8x1xf32>
    %106 = vector.broadcast %105 : vector<8x1xf32> to vector<8x8xf32>
    %107 = arith.subf %103, %106 : vector<8x8xf32>
    %108 = math.exp %107 : vector<8x8xf32>
    %cst_44 = arith.constant dense<0.000000e+00> : vector<8xf32>
    %109 = vector.multi_reduction <add>, %108, %cst_44 [1] : vector<8x8xf32> to vector<8xf32>
    %110 = vector.shape_cast %109 : vector<8xf32> to vector<8x1xf32>
    %111 = tpu.reciprocal %110 {approx = true} : vector<8x1xf32> -> vector<8x1xf32>
    %112 = vector.broadcast %111 : vector<8x1xf32> to vector<8x8xf32>
    %113 = arith.mulf %108, %112 : vector<8x8xf32>
    %114 = arith.truncf %113 : vector<8x8xf32> to vector<8x8xbf16>
    %cst_45 = arith.constant dense<0.000000e+00> : vector<8x32xf32>
    %115 = tpu.matmul %114, %102, %cst_45 {dimension_numbers = #tpu.dot_dimension_numbers<[1], [0], [0], [1], [0, 0, 1, 1], [], []>} : vector<8x8xbf16>, vector<8x32xbf16>, vector<8x32xf32> -> vector<8x32xf32>
    %116 = arith.truncf %115 : vector<8x32xf32> to vector<8x32xbf16>
    %c3 = arith.constant 3 : index
    %c0_46 = arith.constant 0 : index
    %c0_47 = arith.constant 0 : index
    %117 = vector.load %arg10[%c3, %c0_46, %c0_47] : memref<4x32x128xbf16, #tpu.memory_space<vmem>>, vector<1x32x128xbf16>
    %118 = vector.shape_cast %117 : vector<1x32x128xbf16> to vector<32x128xbf16>
    %cst_48 = arith.constant dense<0.000000e+00> : vector<8x128xf32>
    %119 = tpu.matmul %116, %118, %cst_48 {dimension_numbers = #tpu.dot_dimension_numbers<[1], [0], [0], [1], [0, 0, 1, 1], [], []>} : vector<8x32xbf16>, vector<32x128xbf16>, vector<8x128xf32> -> vector<8x128xf32>
    %120 = arith.addf %96, %119 : vector<8x128xf32>
    %121 = vector.extract_strided_slice %8 {offsets = [8, 0], sizes = [8, 128], strides = [1, 1]} : vector<16x128xf32> to vector<8x128xf32>
    %122 = vector.extract_strided_slice %14 {offsets = [8, 0], sizes = [8, 128], strides = [1, 1]} : vector<16x128xf32> to vector<8x128xf32>
    %123 = vector.extract_strided_slice %20 {offsets = [8, 0], sizes = [8, 128], strides = [1, 1]} : vector<16x128xf32> to vector<8x128xf32>
    %cst_49 = arith.constant 0.000000e+00 : f32
    %124 = vector.broadcast %cst_49 : f32 to vector<8x128xf32>
    %125 = vector.extract_strided_slice %121 {offsets = [0, 0], sizes = [8, 32], strides = [1, 1]} : vector<8x128xf32> to vector<8x32xf32>
    %126 = arith.truncf %125 : vector<8x32xf32> to vector<8x32xbf16>
    %127 = vector.extract_strided_slice %122 {offsets = [0, 0], sizes = [8, 32], strides = [1, 1]} : vector<8x128xf32> to vector<8x32xf32>
    %128 = arith.truncf %127 : vector<8x32xf32> to vector<8x32xbf16>
    %129 = vector.extract_strided_slice %123 {offsets = [0, 0], sizes = [8, 32], strides = [1, 1]} : vector<8x128xf32> to vector<8x32xf32>
    %130 = arith.truncf %129 : vector<8x32xf32> to vector<8x32xbf16>
    %cst_50 = arith.constant dense<0.000000e+00> : vector<8x8xf32>
    %131 = tpu.matmul %126, %128, %cst_50 {dimension_numbers = #tpu.dot_dimension_numbers<[1], [1], [0], [0], [0, 0, 1, 0], [], []>} : vector<8x32xbf16>, vector<8x32xbf16>, vector<8x8xf32> -> vector<8x8xf32>
    %cst_51 = arith.constant dense<0xFF800000> : vector<8xf32>
    %132 = vector.multi_reduction <maximumf>, %131, %cst_51 [1] : vector<8x8xf32> to vector<8xf32>
    %133 = vector.shape_cast %132 : vector<8xf32> to vector<8x1xf32>
    %134 = vector.broadcast %133 : vector<8x1xf32> to vector<8x8xf32>
    %135 = arith.subf %131, %134 : vector<8x8xf32>
    %136 = math.exp %135 : vector<8x8xf32>
    %cst_52 = arith.constant dense<0.000000e+00> : vector<8xf32>
    %137 = vector.multi_reduction <add>, %136, %cst_52 [1] : vector<8x8xf32> to vector<8xf32>
    %138 = vector.shape_cast %137 : vector<8xf32> to vector<8x1xf32>
    %139 = tpu.reciprocal %138 {approx = true} : vector<8x1xf32> -> vector<8x1xf32>
    %140 = vector.broadcast %139 : vector<8x1xf32> to vector<8x8xf32>
    %141 = arith.mulf %136, %140 : vector<8x8xf32>
    %142 = arith.truncf %141 : vector<8x8xf32> to vector<8x8xbf16>
    %cst_53 = arith.constant dense<0.000000e+00> : vector<8x32xf32>
    %143 = tpu.matmul %142, %130, %cst_53 {dimension_numbers = #tpu.dot_dimension_numbers<[1], [0], [0], [1], [0, 0, 1, 1], [], []>} : vector<8x8xbf16>, vector<8x32xbf16>, vector<8x32xf32> -> vector<8x32xf32>
    %144 = arith.truncf %143 : vector<8x32xf32> to vector<8x32xbf16>
    %c0_54 = arith.constant 0 : index
    %c0_55 = arith.constant 0 : index
    %c0_56 = arith.constant 0 : index
    %145 = vector.load %arg10[%c0_54, %c0_55, %c0_56] : memref<4x32x128xbf16, #tpu.memory_space<vmem>>, vector<1x32x128xbf16>
    %146 = vector.shape_cast %145 : vector<1x32x128xbf16> to vector<32x128xbf16>
    %cst_57 = arith.constant dense<0.000000e+00> : vector<8x128xf32>
    %147 = tpu.matmul %144, %146, %cst_57 {dimension_numbers = #tpu.dot_dimension_numbers<[1], [0], [0], [1], [0, 0, 1, 1], [], []>} : vector<8x32xbf16>, vector<32x128xbf16>, vector<8x128xf32> -> vector<8x128xf32>
    %148 = arith.addf %124, %147 : vector<8x128xf32>
    %149 = vector.extract_strided_slice %121 {offsets = [0, 32], sizes = [8, 32], strides = [1, 1]} : vector<8x128xf32> to vector<8x32xf32>
    %150 = arith.truncf %149 : vector<8x32xf32> to vector<8x32xbf16>
    %151 = vector.extract_strided_slice %122 {offsets = [0, 32], sizes = [8, 32], strides = [1, 1]} : vector<8x128xf32> to vector<8x32xf32>
    %152 = arith.truncf %151 : vector<8x32xf32> to vector<8x32xbf16>
    %153 = vector.extract_strided_slice %123 {offsets = [0, 32], sizes = [8, 32], strides = [1, 1]} : vector<8x128xf32> to vector<8x32xf32>
    %154 = arith.truncf %153 : vector<8x32xf32> to vector<8x32xbf16>
    %cst_58 = arith.constant dense<0.000000e+00> : vector<8x8xf32>
    %155 = tpu.matmul %150, %152, %cst_58 {dimension_numbers = #tpu.dot_dimension_numbers<[1], [1], [0], [0], [0, 0, 1, 0], [], []>} : vector<8x32xbf16>, vector<8x32xbf16>, vector<8x8xf32> -> vector<8x8xf32>
    %cst_59 = arith.constant dense<0xFF800000> : vector<8xf32>
    %156 = vector.multi_reduction <maximumf>, %155, %cst_59 [1] : vector<8x8xf32> to vector<8xf32>
    %157 = vector.shape_cast %156 : vector<8xf32> to vector<8x1xf32>
    %158 = vector.broadcast %157 : vector<8x1xf32> to vector<8x8xf32>
    %159 = arith.subf %155, %158 : vector<8x8xf32>
    %160 = math.exp %159 : vector<8x8xf32>
    %cst_60 = arith.constant dense<0.000000e+00> : vector<8xf32>
    %161 = vector.multi_reduction <add>, %160, %cst_60 [1] : vector<8x8xf32> to vector<8xf32>
    %162 = vector.shape_cast %161 : vector<8xf32> to vector<8x1xf32>
    %163 = tpu.reciprocal %162 {approx = true} : vector<8x1xf32> -> vector<8x1xf32>
    %164 = vector.broadcast %163 : vector<8x1xf32> to vector<8x8xf32>
    %165 = arith.mulf %160, %164 : vector<8x8xf32>
    %166 = arith.truncf %165 : vector<8x8xf32> to vector<8x8xbf16>
    %cst_61 = arith.constant dense<0.000000e+00> : vector<8x32xf32>
    %167 = tpu.matmul %166, %154, %cst_61 {dimension_numbers = #tpu.dot_dimension_numbers<[1], [0], [0], [1], [0, 0, 1, 1], [], []>} : vector<8x8xbf16>, vector<8x32xbf16>, vector<8x32xf32> -> vector<8x32xf32>
    %168 = arith.truncf %167 : vector<8x32xf32> to vector<8x32xbf16>
    %c1_62 = arith.constant 1 : index
    %c0_63 = arith.constant 0 : index
    %c0_64 = arith.constant 0 : index
    %169 = vector.load %arg10[%c1_62, %c0_63, %c0_64] : memref<4x32x128xbf16, #tpu.memory_space<vmem>>, vector<1x32x128xbf16>
    %170 = vector.shape_cast %169 : vector<1x32x128xbf16> to vector<32x128xbf16>
    %cst_65 = arith.constant dense<0.000000e+00> : vector<8x128xf32>
    %171 = tpu.matmul %168, %170, %cst_65 {dimension_numbers = #tpu.dot_dimension_numbers<[1], [0], [0], [1], [0, 0, 1, 1], [], []>} : vector<8x32xbf16>, vector<32x128xbf16>, vector<8x128xf32> -> vector<8x128xf32>
    %172 = arith.addf %148, %171 : vector<8x128xf32>
    %173 = vector.extract_strided_slice %121 {offsets = [0, 64], sizes = [8, 32], strides = [1, 1]} : vector<8x128xf32> to vector<8x32xf32>
    %174 = arith.truncf %173 : vector<8x32xf32> to vector<8x32xbf16>
    %175 = vector.extract_strided_slice %122 {offsets = [0, 64], sizes = [8, 32], strides = [1, 1]} : vector<8x128xf32> to vector<8x32xf32>
    %176 = arith.truncf %175 : vector<8x32xf32> to vector<8x32xbf16>
    %177 = vector.extract_strided_slice %123 {offsets = [0, 64], sizes = [8, 32], strides = [1, 1]} : vector<8x128xf32> to vector<8x32xf32>
    %178 = arith.truncf %177 : vector<8x32xf32> to vector<8x32xbf16>
    %cst_66 = arith.constant dense<0.000000e+00> : vector<8x8xf32>
    %179 = tpu.matmul %174, %176, %cst_66 {dimension_numbers = #tpu.dot_dimension_numbers<[1], [1], [0], [0], [0, 0, 1, 0], [], []>} : vector<8x32xbf16>, vector<8x32xbf16>, vector<8x8xf32> -> vector<8x8xf32>
    %cst_67 = arith.constant dense<0xFF800000> : vector<8xf32>
    %180 = vector.multi_reduction <maximumf>, %179, %cst_67 [1] : vector<8x8xf32> to vector<8xf32>
    %181 = vector.shape_cast %180 : vector<8xf32> to vector<8x1xf32>
    %182 = vector.broadcast %181 : vector<8x1xf32> to vector<8x8xf32>
    %183 = arith.subf %179, %182 : vector<8x8xf32>
    %184 = math.exp %183 : vector<8x8xf32>
    %cst_68 = arith.constant dense<0.000000e+00> : vector<8xf32>
    %185 = vector.multi_reduction <add>, %184, %cst_68 [1] : vector<8x8xf32> to vector<8xf32>
    %186 = vector.shape_cast %185 : vector<8xf32> to vector<8x1xf32>
    %187 = tpu.reciprocal %186 {approx = true} : vector<8x1xf32> -> vector<8x1xf32>
    %188 = vector.broadcast %187 : vector<8x1xf32> to vector<8x8xf32>
    %189 = arith.mulf %184, %188 : vector<8x8xf32>
    %190 = arith.truncf %189 : vector<8x8xf32> to vector<8x8xbf16>
    %cst_69 = arith.constant dense<0.000000e+00> : vector<8x32xf32>
    %191 = tpu.matmul %190, %178, %cst_69 {dimension_numbers = #tpu.dot_dimension_numbers<[1], [0], [0], [1], [0, 0, 1, 1], [], []>} : vector<8x8xbf16>, vector<8x32xbf16>, vector<8x32xf32> -> vector<8x32xf32>
    %192 = arith.truncf %191 : vector<8x32xf32> to vector<8x32xbf16>
    %c2_70 = arith.constant 2 : index
    %c0_71 = arith.constant 0 : index
    %c0_72 = arith.constant 0 : index
    %193 = vector.load %arg10[%c2_70, %c0_71, %c0_72] : memref<4x32x128xbf16, #tpu.memory_space<vmem>>, vector<1x32x128xbf16>
    %194 = vector.shape_cast %193 : vector<1x32x128xbf16> to vector<32x128xbf16>
    %cst_73 = arith.constant dense<0.000000e+00> : vector<8x128xf32>
    %195 = tpu.matmul %192, %194, %cst_73 {dimension_numbers = #tpu.dot_dimension_numbers<[1], [0], [0], [1], [0, 0, 1, 1], [], []>} : vector<8x32xbf16>, vector<32x128xbf16>, vector<8x128xf32> -> vector<8x128xf32>
    %196 = arith.addf %172, %195 : vector<8x128xf32>
    %197 = vector.extract_strided_slice %121 {offsets = [0, 96], sizes = [8, 32], strides = [1, 1]} : vector<8x128xf32> to vector<8x32xf32>
    %198 = arith.truncf %197 : vector<8x32xf32> to vector<8x32xbf16>
    %199 = vector.extract_strided_slice %122 {offsets = [0, 96], sizes = [8, 32], strides = [1, 1]} : vector<8x128xf32> to vector<8x32xf32>
    %200 = arith.truncf %199 : vector<8x32xf32> to vector<8x32xbf16>
    %201 = vector.extract_strided_slice %123 {offsets = [0, 96], sizes = [8, 32], strides = [1, 1]} : vector<8x128xf32> to vector<8x32xf32>
    %202 = arith.truncf %201 : vector<8x32xf32> to vector<8x32xbf16>
    %cst_74 = arith.constant dense<0.000000e+00> : vector<8x8xf32>
    %203 = tpu.matmul %198, %200, %cst_74 {dimension_numbers = #tpu.dot_dimension_numbers<[1], [1], [0], [0], [0, 0, 1, 0], [], []>} : vector<8x32xbf16>, vector<8x32xbf16>, vector<8x8xf32> -> vector<8x8xf32>
    %cst_75 = arith.constant dense<0xFF800000> : vector<8xf32>
    %204 = vector.multi_reduction <maximumf>, %203, %cst_75 [1] : vector<8x8xf32> to vector<8xf32>
    %205 = vector.shape_cast %204 : vector<8xf32> to vector<8x1xf32>
    %206 = vector.broadcast %205 : vector<8x1xf32> to vector<8x8xf32>
    %207 = arith.subf %203, %206 : vector<8x8xf32>
    %208 = math.exp %207 : vector<8x8xf32>
    %cst_76 = arith.constant dense<0.000000e+00> : vector<8xf32>
    %209 = vector.multi_reduction <add>, %208, %cst_76 [1] : vector<8x8xf32> to vector<8xf32>
    %210 = vector.shape_cast %209 : vector<8xf32> to vector<8x1xf32>
    %211 = tpu.reciprocal %210 {approx = true} : vector<8x1xf32> -> vector<8x1xf32>
    %212 = vector.broadcast %211 : vector<8x1xf32> to vector<8x8xf32>
    %213 = arith.mulf %208, %212 : vector<8x8xf32>
    %214 = arith.truncf %213 : vector<8x8xf32> to vector<8x8xbf16>
    %cst_77 = arith.constant dense<0.000000e+00> : vector<8x32xf32>
    %215 = tpu.matmul %214, %202, %cst_77 {dimension_numbers = #tpu.dot_dimension_numbers<[1], [0], [0], [1], [0, 0, 1, 1], [], []>} : vector<8x8xbf16>, vector<8x32xbf16>, vector<8x32xf32> -> vector<8x32xf32>
    %216 = arith.truncf %215 : vector<8x32xf32> to vector<8x32xbf16>
    %c3_78 = arith.constant 3 : index
    %c0_79 = arith.constant 0 : index
    %c0_80 = arith.constant 0 : index
    %217 = vector.load %arg10[%c3_78, %c0_79, %c0_80] : memref<4x32x128xbf16, #tpu.memory_space<vmem>>, vector<1x32x128xbf16>
    %218 = vector.shape_cast %217 : vector<1x32x128xbf16> to vector<32x128xbf16>
    %cst_81 = arith.constant dense<0.000000e+00> : vector<8x128xf32>
    %219 = tpu.matmul %216, %218, %cst_81 {dimension_numbers = #tpu.dot_dimension_numbers<[1], [0], [0], [1], [0, 0, 1, 1], [], []>} : vector<8x32xbf16>, vector<32x128xbf16>, vector<8x128xf32> -> vector<8x128xf32>
    %220 = arith.addf %196, %219 : vector<8x128xf32>
    %221 = tpu.concatenate %120, %220 in 0 : vector<8x128xf32>, vector<8x128xf32> -> vector<16x128xf32>
    %c0_82 = arith.constant 0 : index
    %c0_83 = arith.constant 0 : index
    %222 = vector.load %arg11[%c0_82, %c0_83] : memref<1x128xf32, #tpu.memory_space<vmem>>, vector<1x128xf32>
    %223 = vector.broadcast %222 : vector<1x128xf32> to vector<16x128xf32>
    %224 = arith.addf %221, %223 : vector<16x128xf32>
    %225 = arith.addf %0, %224 : vector<16x128xf32>
    %c0_84 = arith.constant 0 : index
    %c0_85 = arith.constant 0 : index
    %226 = vector.load %arg12[%c0_84, %c0_85] : memref<1x128xf32, #tpu.memory_space<vmem>>, vector<1x128xf32>
    %c0_86 = arith.constant 0 : index
    %c0_87 = arith.constant 0 : index
    %227 = vector.load %arg13[%c0_86, %c0_87] : memref<1x128xf32, #tpu.memory_space<vmem>>, vector<1x128xf32>
    %cst_88 = arith.constant dense<0.000000e+00> : vector<16xf32>
    %228 = vector.multi_reduction <add>, %225, %cst_88 [1] : vector<16x128xf32> to vector<16xf32>
    %229 = vector.shape_cast %228 : vector<16xf32> to vector<16x1xf32>
    %cst_89 = arith.constant 1.280000e+02 : f32
    %230 = vector.broadcast %cst_89 : f32 to vector<16x1xf32>
    %231 = arith.divf %229, %230 : vector<16x1xf32>
    %232 = vector.broadcast %231 : vector<16x1xf32> to vector<16x128xf32>
    %233 = arith.subf %225, %232 : vector<16x128xf32>
    %234 = vector.broadcast %231 : vector<16x1xf32> to vector<16x128xf32>
    %235 = arith.subf %225, %234 : vector<16x128xf32>
    %236 = arith.mulf %233, %235 : vector<16x128xf32>
    %cst_90 = arith.constant dense<0.000000e+00> : vector<16xf32>
    %237 = vector.multi_reduction <add>, %236, %cst_90 [1] : vector<16x128xf32> to vector<16xf32>
    %238 = vector.shape_cast %237 : vector<16xf32> to vector<16x1xf32>
    %cst_91 = arith.constant 1.280000e+02 : f32
    %239 = vector.broadcast %cst_91 : f32 to vector<16x1xf32>
    %240 = arith.divf %238, %239 : vector<16x1xf32>
    %241 = vector.broadcast %231 : vector<16x1xf32> to vector<16x128xf32>
    %242 = arith.subf %225, %241 : vector<16x128xf32>
    %cst_92 = arith.constant 9.99999974E-6 : f32
    %243 = vector.broadcast %cst_92 : f32 to vector<16x1xf32>
    %244 = arith.addf %240, %243 : vector<16x1xf32>
    %245 = math.rsqrt %244 : vector<16x1xf32>
    %246 = vector.broadcast %245 : vector<16x1xf32> to vector<16x128xf32>
    %247 = arith.mulf %242, %246 : vector<16x128xf32>
    %248 = vector.broadcast %226 : vector<1x128xf32> to vector<16x128xf32>
    %249 = arith.mulf %247, %248 : vector<16x128xf32>
    %250 = vector.broadcast %227 : vector<1x128xf32> to vector<16x128xf32>
    %251 = arith.addf %249, %250 : vector<16x128xf32>
    %252 = arith.truncf %251 : vector<16x128xf32> to vector<16x128xbf16>
    %c0_93 = arith.constant 0 : index
    %c0_94 = arith.constant 0 : index
    %253 = vector.load %arg14[%c0_93, %c0_94] : memref<128x256xbf16, #tpu.memory_space<vmem>>, vector<128x256xbf16>
    %cst_95 = arith.constant dense<0.000000e+00> : vector<16x256xf32>
    %254 = tpu.matmul %252, %253, %cst_95 {dimension_numbers = #tpu.dot_dimension_numbers<[1], [0], [0], [1], [0, 0, 1, 1], [], []>} : vector<16x128xbf16>, vector<128x256xbf16>, vector<16x256xf32> -> vector<16x256xf32>
    %c0_96 = arith.constant 0 : index
    %c0_97 = arith.constant 0 : index
    %255 = vector.load %arg15[%c0_96, %c0_97] : memref<1x256xf32, #tpu.memory_space<vmem>>, vector<1x256xf32>
    %256 = vector.broadcast %255 : vector<1x256xf32> to vector<16x256xf32>
    %257 = arith.addf %254, %256 : vector<16x256xf32>
    %cst_98 = arith.constant 0.000000e+00 : f32
    %258 = vector.broadcast %cst_98 : f32 to vector<16x256xf32>
    %259 = arith.maximumf %257, %258 : vector<16x256xf32>
    %260 = arith.truncf %259 : vector<16x256xf32> to vector<16x256xbf16>
    %c0_99 = arith.constant 0 : index
    %c0_100 = arith.constant 0 : index
    %261 = vector.load %arg16[%c0_99, %c0_100] : memref<256x128xbf16, #tpu.memory_space<vmem>>, vector<256x128xbf16>
    %cst_101 = arith.constant dense<0.000000e+00> : vector<16x128xf32>
    %262 = tpu.matmul %260, %261, %cst_101 {dimension_numbers = #tpu.dot_dimension_numbers<[1], [0], [0], [1], [0, 0, 1, 1], [], []>} : vector<16x256xbf16>, vector<256x128xbf16>, vector<16x128xf32> -> vector<16x128xf32>
    %c0_102 = arith.constant 0 : index
    %c0_103 = arith.constant 0 : index
    %263 = vector.load %arg17[%c0_102, %c0_103] : memref<1x128xf32, #tpu.memory_space<vmem>>, vector<1x128xf32>
    %264 = vector.broadcast %263 : vector<1x128xf32> to vector<16x128xf32>
    %265 = arith.addf %262, %264 : vector<16x128xf32>
    %266 = arith.addf %251, %265 : vector<16x128xf32>
    %c0_104 = arith.constant 0 : index
    %c0_105 = arith.constant 0 : index
    %267 = vector.load %arg18[%c0_104, %c0_105] : memref<1x128xf32, #tpu.memory_space<vmem>>, vector<1x128xf32>
    %c0_106 = arith.constant 0 : index
    %c0_107 = arith.constant 0 : index
    %268 = vector.load %arg19[%c0_106, %c0_107] : memref<1x128xf32, #tpu.memory_space<vmem>>, vector<1x128xf32>
    %cst_108 = arith.constant dense<0.000000e+00> : vector<16xf32>
    %269 = vector.multi_reduction <add>, %266, %cst_108 [1] : vector<16x128xf32> to vector<16xf32>
    %270 = vector.shape_cast %269 : vector<16xf32> to vector<16x1xf32>
    %cst_109 = arith.constant 1.280000e+02 : f32
    %271 = vector.broadcast %cst_109 : f32 to vector<16x1xf32>
    %272 = arith.divf %270, %271 : vector<16x1xf32>
    %273 = vector.broadcast %272 : vector<16x1xf32> to vector<16x128xf32>
    %274 = arith.subf %266, %273 : vector<16x128xf32>
    %275 = vector.broadcast %272 : vector<16x1xf32> to vector<16x128xf32>
    %276 = arith.subf %266, %275 : vector<16x128xf32>
    %277 = arith.mulf %274, %276 : vector<16x128xf32>
    %cst_110 = arith.constant dense<0.000000e+00> : vector<16xf32>
    %278 = vector.multi_reduction <add>, %277, %cst_110 [1] : vector<16x128xf32> to vector<16xf32>
    %279 = vector.shape_cast %278 : vector<16xf32> to vector<16x1xf32>
    %cst_111 = arith.constant 1.280000e+02 : f32
    %280 = vector.broadcast %cst_111 : f32 to vector<16x1xf32>
    %281 = arith.divf %279, %280 : vector<16x1xf32>
    %282 = vector.broadcast %272 : vector<16x1xf32> to vector<16x128xf32>
    %283 = arith.subf %266, %282 : vector<16x128xf32>
    %cst_112 = arith.constant 9.99999974E-6 : f32
    %284 = vector.broadcast %cst_112 : f32 to vector<16x1xf32>
    %285 = arith.addf %281, %284 : vector<16x1xf32>
    %286 = math.rsqrt %285 : vector<16x1xf32>
    %287 = vector.broadcast %286 : vector<16x1xf32> to vector<16x128xf32>
    %288 = arith.mulf %283, %287 : vector<16x128xf32>
    %289 = vector.broadcast %267 : vector<1x128xf32> to vector<16x128xf32>
    %290 = arith.mulf %288, %289 : vector<16x128xf32>
    %291 = vector.broadcast %268 : vector<1x128xf32> to vector<16x128xf32>
    %292 = arith.addf %290, %291 : vector<16x128xf32>
    %c0_113 = arith.constant 0 : index
    %c0_114 = arith.constant 0 : index
    %293 = vector.load %arg20[%c0_113, %c0_114] : memref<16x128xf32, #tpu.memory_space<vmem>>, vector<16x128xf32>
    tpu.vector_store %arg20[%c0_113, %c0_114], %292 {strides = array<i32>} : memref<16x128xf32, #tpu.memory_space<vmem>>, vector<16x128xf32>,
    return
  }
  func.func @transform_0(%arg0: i32) -> (i32, i32) {
    %c0_i32 = arith.constant 0 : i32
    %c0_i32_0 = arith.constant 0 : i32
    %c0_i32_1 = arith.constant 0 : i32
    return %c0_i32, %c0_i32_0 : i32, i32
  }
  func.func @transform_1(%arg0: i32) -> (i32, i32) {
    %c0_i32 = arith.constant 0 : i32
    %c0_i32_0 = arith.constant 0 : i32
    %c0_i32_1 = arith.constant 0 : i32
    return %c0_i32, %c0_i32_0 : i32, i32
  }
  func.func @transform_2(%arg0: i32) -> (i32, i32) {
    %c0_i32 = arith.constant 0 : i32
    %c0_i32_0 = arith.constant 0 : i32
    %c0_i32_1 = arith.constant 0 : i32
    return %c0_i32, %c0_i32_0 : i32, i32
  }
  func.func @transform_3(%arg0: i32) -> (i32, i32) {
    %c0_i32 = arith.constant 0 : i32
    %c0_i32_0 = arith.constant 0 : i32
    %c0_i32_1 = arith.constant 0 : i32
    return %c0_i32, %c0_i32_0 : i32, i32
  }
  func.func @transform_4(%arg0: i32) -> (i32, i32) {
    %c0_i32 = arith.constant 0 : i32
    %c0_i32_0 = arith.constant 0 : i32
    %c0_i32_1 = arith.constant 0 : i32
    return %c0_i32, %c0_i32_0 : i32, i32
  }
  func.func @transform_5(%arg0: i32) -> (i32, i32) {
    %c0_i32 = arith.constant 0 : i32
    %c0_i32_0 = arith.constant 0 : i32
    %c0_i32_1 = arith.constant 0 : i32
    return %c0_i32, %c0_i32_0 : i32, i32
  }
  func.func @transform_6(%arg0: i32) -> (i32, i32) {
    %c0_i32 = arith.constant 0 : i32
    %c0_i32_0 = arith.constant 0 : i32
    %c0_i32_1 = arith.constant 0 : i32
    return %c0_i32, %c0_i32_0 : i32, i32
  }
  func.func @transform_7(%arg0: i32) -> (i32, i32) {
    %c0_i32 = arith.constant 0 : i32
    %c0_i32_0 = arith.constant 0 : i32
    %c0_i32_1 = arith.constant 0 : i32
    return %c0_i32, %c0_i32_0 : i32, i32
  }
  func.func @transform_8(%arg0: i32) -> (i32, i32) {
    %c0_i32 = arith.constant 0 : i32
    %c0_i32_0 = arith.constant 0 : i32
    %c0_i32_1 = arith.constant 0 : i32
    return %c0_i32, %c0_i32_0 : i32, i32
  }
  func.func @transform_9(%arg0: i32) -> (i32, i32, i32) {
    %c0_i32 = arith.constant 0 : i32
    %c0_i32_0 = arith.constant 0 : i32
    %c0_i32_1 = arith.constant 0 : i32
    %c0_i32_2 = arith.constant 0 : i32
    return %c0_i32, %c0_i32_0, %c0_i32_1 : i32, i32, i32
  }
  func.func @transform_10(%arg0: i32) -> (i32, i32) {
    %c0_i32 = arith.constant 0 : i32
    %c0_i32_0 = arith.constant 0 : i32
    %c0_i32_1 = arith.constant 0 : i32
    return %c0_i32, %c0_i32_0 : i32, i32
  }
  func.func @transform_11(%arg0: i32) -> (i32, i32) {
    %c0_i32 = arith.constant 0 : i32
    %c0_i32_0 = arith.constant 0 : i32
    %c0_i32_1 = arith.constant 0 : i32
    return %c0_i32, %c0_i32_0 : i32, i32
  }
  func.func @transform_12(%arg0: i32) -> (i32, i32) {
    %c0_i32 = arith.constant 0 : i32
    %c0_i32_0 = arith.constant 0 : i32
    %c0_i32_1 = arith.constant 0 : i32
    return %c0_i32, %c0_i32_0 : i32, i32
  }
  func.func @transform_13(%arg0: i32) -> (i32, i32) {
    %c0_i32 = arith.constant 0 : i32
    %c0_i32_0 = arith.constant 0 : i32
    %c0_i32_1 = arith.constant 0 : i32
    return %c0_i32, %c0_i32_0 : i32, i32
  }
  func.func @transform_14(%arg0: i32) -> (i32, i32) {
    %c0_i32 = arith.constant 0 : i32
    %c0_i32_0 = arith.constant 0 : i32
    %c0_i32_1 = arith.constant 0 : i32
    return %c0_i32, %c0_i32_0 : i32, i32
  }
  func.func @transform_15(%arg0: i32) -> (i32, i32) {
    %c0_i32 = arith.constant 0 : i32
    %c0_i32_0 = arith.constant 0 : i32
    %c0_i32_1 = arith.constant 0 : i32
    return %c0_i32, %c0_i32_0 : i32, i32
  }
  func.func @transform_16(%arg0: i32) -> (i32, i32) {
    %c0_i32 = arith.constant 0 : i32
    %c0_i32_0 = arith.constant 0 : i32
    %c0_i32_1 = arith.constant 0 : i32
    return %c0_i32, %c0_i32_0 : i32, i32
  }
  func.func @transform_17(%arg0: i32) -> (i32, i32) {
    %c0_i32 = arith.constant 0 : i32
    %c0_i32_0 = arith.constant 0 : i32
    %c0_i32_1 = arith.constant 0 : i32
    return %c0_i32, %c0_i32_0 : i32, i32
  }
  func.func @transform_18(%arg0: i32) -> (i32, i32) {
    %c0_i32 = arith.constant 0 : i32
    %c0_i32_0 = arith.constant 0 : i32
    %c0_i32_1 = arith.constant 0 : i32
    return %c0_i32, %c0_i32_0 : i32, i32
  }
  func.func @transform_19(%arg0: i32) -> (i32, i32) {
    %c0_i32 = arith.constant 0 : i32
    %c0_i32_0 = arith.constant 0 : i32
    %c0_i32_1 = arith.constant 0 : i32
    return %c0_i32, %c0_i32_0 : i32, i32
  }
}

</mosaic_0001>

<bundles_post_ra>
// kernel: tpu_custom_call.1
= control target key start
LH: loop header
LB: loop body
LE: loop exit
PB: predicated region body
PF: predicated region fallthrough
CT: control target
= control target key end

     0   :  { %s3686_s0 = inlined_call_operand.hbm [shape: f32[16,128], index: 0, kind: input, shape index: {}]   ;;  %s3687_s1 = inlined_call_operand.hbm [shape: f32[16,128], index: 1, kind: input, shape index: {}]   ;;  %s3688_s2 = inlined_call_operand.hbm [shape: f32[16,128], index: 2, kind: input, shape index: {}]   ;;  %s3689_s3 = inlined_call_operand.hbm [shape: bf16[128,128], index: 3, kind: input, shape index: {}]   ;;  %s3690_s4 = inlined_call_operand.vmem [shape: f32[1,128], index: 4, kind: input, shape index: {}]   ;;  %s3691_s5 = inlined_call_operand.hbm [shape: bf16[128,128], index: 5, kind: input, shape index: {}]   ;;  %s3692_s6 = inlined_call_operand.vmem [shape: f32[1,128], index: 6, kind: input, shape index: {}]   ;;  %s3693_s7 = inlined_call_operand.hbm [shape: bf16[128,128], index: 7, kind: input, shape index: {}]   ;;  %s3694_s8 = inlined_call_operand.vmem [shape: f32[1,128], index: 8, kind: input, shape index: {}]   ;;  %s3695_s9 = inlined_call_operand.hbm [shape: bf16[4,32,128], index: 9, kind: input, shape index: {}]   ;;  %s3696_s10 = inlined_call_operand.vmem [shape: f32[1,128], index: 10, kind: input, shape index: {}]   ;;  %s3697_s11 = inlined_call_operand.vmem [shape: f32[1,128], index: 11, kind: input, shape index: {}]   ;;  %s3698_s12 = inlined_call_operand.vmem [shape: f32[1,128], index: 12, kind: input, shape index: {}]   ;;  %s3699_s13 = inlined_call_operand.hbm [shape: bf16[128,256], index: 13, kind: input, shape index: {}]   ;;  %s3700_s14 = inlined_call_operand.vmem [shape: f32[1,256], index: 14, kind: input, shape index: {}]   ;;  %s3701_s15 = inlined_call_operand.hbm [shape: bf16[256,128], index: 15, kind: input, shape index: {}]   ;;  %s3702_s16 = inlined_call_operand.vmem [shape: f32[1,128], index: 16, kind: input, shape index: {}]   ;;  %s3703_s17 = inlined_call_operand.vmem [shape: f32[1,128], index: 17, kind: input, shape index: {}]   ;;  %s3704_s18 = inlined_call_operand.vmem [shape: f32[1,128], index: 18, kind: input, shape index: {}]   ;;  %s3705_s19 = inlined_call_operand.hbm [shape: f32[16,128], index: 19, kind: output, shape index: {}]  }
   0x1   :  { %3717 = sst [smem:[#allocation24_spill]] %s3686_s0 }
   0x2   :  { %3718 = sst [smem:[#allocation25_spill]] %s3687_s1 }
   0x3   :  { %3719 = sst [smem:[#allocation26_spill]] %s3688_s2 }
   0x4   :  { %3720 = sst [smem:[#allocation27_spill]] %s3689_s3 }
   0x5   :  { %3721 = sst [smem:[#allocation28_spill]] %s3704_s18 }
   0x6   :  { %3722 = sst [smem:[#allocation29_spill]] %s3705_s19 }
   0x7   :  { %24 = vsyncpa [#allocation3], 0 }
   0x8   :  { %25 = vsyncpa [#allocation6], 0 }
   0x9   :  { %26 = vsyncpa [#allocation9], 0 }
   0xa   :  { %27 = vsyncpa [#allocation12], 0 }
   0xb   :  { %28 = vsyncpa [#allocation15], 0 }
   0xc   :  { %29 = vsyncpa [#allocation4], 0  ;;  %s3074_s0 = smov [#allocation5]   ;;  %s3075_s20 = smov [#allocation8]  }
   0xd   :  { %s47_s30 = sshll.u32 %s3074_s0, 4  ;;  %s71_s21 = sshll.u32 %s3075_s20, 4  ;;  %s48_s30 = int_to_ptr.vmem [resolvable:$true] %s47_s30  ;;  %s3193_s21 = int_to_ptr.vmem [resolvable:$true] %s71_s21 }
   0xe   :  { %s3723_s2 = sld [smem:[#allocation25_spill]] }
  0x14   :  { %s2842_s23 = scalar_lea.hbm %s3723_s2, 256 }
  0x15   :  { %p2843_p0 = scmp.ne.s32.totalorder %s3723_s2, %s2842_s23  ;;  %p2846_p1 = scmp.lt.u32.totalorder %s2842_s23, %s3723_s2 }
  0x17   :  { %p2848_p2 = pnand %p2846_p1, %p2843_p0 }
  0x19   :  { %2851 = shalt.err (!%p2848_p2)
}
  0x1a   :  { %s2852_s27 = scalar_lea.vmem %s48_s30, 256  ;;  %p2857_p4 = scmp.lt.s32.totalorder %s48_s30, %s48_s30 }
  0x1b   :  { %p2853_p3 = scmp.ne.s32.totalorder %s48_s30, %s2852_s27  ;;  %p2858_p5 = scmp.lt.s32.totalorder %s2852_s27, %s2852_s27 }
  0x1d   :  { %p2859_p6 = por %p2858_p5, %p2857_p4 }
  0x1f   :  { %p2860_p7 = pnand %p2859_p6, %p2853_p3 }
  0x21   :  { %2863 = shalt.err (!%p2860_p7)
}
  0x22   :  { %s3711_s28 = smov 128   ;;  %s3713_s29 = smov 8  }
  0x23   :  { %53 = dma.hbm_to_vmem [thread:$0]  %s3723_s2, 256, %s48_s30, [#allocation6], %s3711_s28, %s3711_s28, %s3713_s29  }
  0x24   :  { %s3724_s23 = sld [smem:[#allocation27_spill]] }
  0x2a   :  { %s2864_s24 = scalar_lea.hbm %s3724_s23, 1024 }
  0x2b   :  { %p2865_p8 = scmp.ne.s32.totalorder %s3724_s23, %s2864_s24  ;;  %p2868_p9 = scmp.lt.u32.totalorder %s2864_s24, %s3724_s23 }
  0x2d   :  { %p2870_p10 = pnand %p2868_p9, %p2865_p8 }
  0x2f   :  { %2873 = shalt.err (!%p2870_p10)
}
  0x30   :  { %s2874_s19 = scalar_lea.vmem %s3193_s21, 1024  ;;  %p2879_p12 = scmp.lt.s32.totalorder %s3193_s21, %s3193_s21 }
  0x31   :  { %p2875_p11 = scmp.ne.s32.totalorder %s3193_s21, %s2874_s19  ;;  %p2880_p13 = scmp.lt.s32.totalorder %s2874_s19, %s2874_s19 }
  0x33   :  { %p2881_p0 = por %p2880_p13, %p2879_p12 }
  0x35   :  { %p2882_p1 = pnand %p2881_p0, %p2875_p11 }
  0x37   :  { %2885 = shalt.err (!%p2882_p1)
}
  0x38   :  { %s3715_s30 = smov 64   ;;  %s3079_s2 = smov 4  }
  0x39   :  { %77 = dma.hbm_to_vmem [thread:$0]  %s3724_s23, 1024, %s3193_s21, [#allocation9], %s3715_s30, %s3715_s30, %s3079_s2  }
  0x3a   :  { %s3080_s1 = smov [#allocation11]   ;;  %s3081_s24 = smov [#allocation14]  }
  0x3b   :  { %s99_s22 = sshll.u32 %s3080_s1, 4  ;;  %s131_s25 = sshll.u32 %s3081_s24, 4  ;;  %s100_s22 = int_to_ptr.vmem [resolvable:$true] %s99_s22  ;;  %s3230_s25 = int_to_ptr.vmem [resolvable:$true] %s131_s25 }
  0x3c   :  { %s2886_s26 = scalar_lea.hbm %s3693_s7, 1024 }
  0x3d   :  { %p2887_p2 = scmp.ne.s32.totalorder %s3693_s7, %s2886_s26  ;;  %p2890_p3 = scmp.lt.u32.totalorder %s2886_s26, %s3693_s7 }
  0x3f   :  { %p2892_p4 = pnand %p2890_p3, %p2887_p2 }
  0x41   :  { %2895 = shalt.err (!%p2892_p4)
}
  0x42   :  { %s2896_s21 = scalar_lea.vmem %s100_s22, 1024  ;;  %p2901_p6 = scmp.lt.s32.totalorder %s100_s22, %s100_s22 }
  0x43   :  { %p2897_p5 = scmp.ne.s32.totalorder %s100_s22, %s2896_s21  ;;  %p2902_p7 = scmp.lt.s32.totalorder %s2896_s21, %s2896_s21 }
  0x45   :  { %p2903_p8 = por %p2902_p7, %p2901_p6 }
  0x47   :  { %p2904_p9 = pnand %p2903_p8, %p2897_p5 }
  0x49   :  { %2907 = shalt.err (!%p2904_p9)
}
  0x4a   :  { %105 = dma.hbm_to_vmem [thread:$0]  %s3693_s7, 1024, %s100_s22, [#allocation12], %s3715_s30, %s3715_s30, %s3079_s2  }
  0x4b   :  { %s2908_s18 = scalar_lea.hbm %s3699_s13, 2048 }
  0x4c   :  { %p2909_p10 = scmp.ne.s32.totalorder %s3699_s13, %s2908_s18  ;;  %p2912_p11 = scmp.lt.u32.totalorder %s2908_s18, %s3699_s13 }
  0x4e   :  { %p2914_p12 = pnand %p2912_p11, %p2909_p10 }
  0x50   :  { %2917 = shalt.err (!%p2914_p12)
}
  0x51   :  { %s2918_s3 = scalar_lea.vmem %s3230_s25, 2048  ;;  %p2923_p0 = scmp.lt.s32.totalorder %s3230_s25, %s3230_s25 }
  0x52   :  { %p2919_p13 = scmp.ne.s32.totalorder %s3230_s25, %s2918_s3  ;;  %p2924_p1 = scmp.lt.s32.totalorder %s2918_s3, %s2918_s3 }
  0x54   :  { %p2925_p2 = por %p2924_p1, %p2923_p0 }
  0x56   :  { %p2926_p3 = pnand %p2925_p2, %p2919_p13 }
  0x58   :  { %2929 = shalt.err (!%p2926_p3)
}
  0x59   :  { %s3725_s7 = smov 8   ;;  %s3726_s22 = smov 128  }
  0x5a   :  { %137 = dma.hbm_to_vmem [thread:$0]  %s3699_s13, 2048, %s3230_s25, [#allocation15], %s3726_s22, %s3726_s22, %s3725_s7  }
  0x5b   :  { %s3082_s21 = smov [#allocation2]   ;;  %s3083_s0 = smov [#allocation7]  }
  0x5c   :  { %s35_s23 = sshll.u32 %s3082_s21, 4  ;;  %s59_s28 = sshll.u32 %s3083_s0, 4  ;;  %s36_s23 = int_to_ptr.vmem [resolvable:$true] %s35_s23  ;;  %s3267_s28 = int_to_ptr.vmem [resolvable:$true] %s59_s28 }
  0x5d   :  { %s3727_s29 = sld [smem:[#allocation24_spill]] }
  0x63   :  { %s2930_s1 = scalar_lea.hbm %s3727_s29, 256 }
  0x64   :  { %p2931_p4 = scmp.ne.s32.totalorder %s3727_s29, %s2930_s1  ;;  %p2934_p5 = scmp.lt.u32.totalorder %s2930_s1, %s3727_s29 }
  0x66   :  { %p2936_p6 = pnand %p2934_p5, %p2931_p4 }
  0x68   :  { %2939 = shalt.err (!%p2936_p6)
}
  0x69   :  { %s2940_s13 = scalar_lea.vmem %s36_s23, 256  ;;  %p2945_p8 = scmp.lt.s32.totalorder %s36_s23, %s36_s23 }
  0x6a   :  { %p2941_p7 = scmp.ne.s32.totalorder %s36_s23, %s2940_s13  ;;  %p2946_p9 = scmp.lt.s32.totalorder %s2940_s13, %s2940_s13 }
  0x6c   :  { %p2947_p10 = por %p2946_p9, %p2945_p8 }
  0x6e   :  { %p2948_p11 = pnand %p2947_p10, %p2941_p7 }
  0x70   :  { %2951 = shalt.err (!%p2948_p11)
}
  0x71   :  { %41 = dma.hbm_to_vmem [thread:$0]  %s3727_s29, 256, %s36_s23, [#allocation3], %s3726_s22, %s3726_s22, %s3725_s7  }
  0x72   :  { %s3728_s30 = sld [smem:[#allocation26_spill]] }
  0x78   :  { %s2952_s0 = scalar_lea.hbm %s3728_s30, 256 }
  0x79   :  { %p2953_p12 = scmp.ne.s32.totalorder %s3728_s30, %s2952_s0  ;;  %p2956_p13 = scmp.lt.u32.totalorder %s2952_s0, %s3728_s30 }
  0x7b   :  { %p2958_p0 = pnand %p2956_p13, %p2953_p12 }
  0x7d   :  { %2961 = shalt.err (!%p2958_p0)
}
  0x7e   :  { %s2962_s19 = scalar_lea.vmem %s3267_s28, 256  ;;  %p2967_p2 = scmp.lt.s32.totalorder %s3267_s28, %s3267_s28 }
  0x7f   :  { %p2963_p1 = scmp.ne.s32.totalorder %s3267_s28, %s2962_s19  ;;  %p2968_p3 = scmp.lt.s32.totalorder %s2962_s19, %s2962_s19 }
  0x81   :  { %p2969_p4 = por %p2968_p3, %p2967_p2 }
  0x83   :  { %p2970_p5 = pnand %p2969_p4, %p2963_p1 }
  0x85   :  { %2973 = shalt.err (!%p2970_p5)
}
  0x86   :  { %65 = dma.hbm_to_vmem [thread:$0]  %s3728_s30, 256, %s3267_s28, [#allocation6], %s3726_s22, %s3726_s22, %s3725_s7  }
  0x87   :  { %s3084_s3 = smov [#allocation10]   ;;  %s3085_s25 = smov [#allocation13]  }
  0x88   :  { %s85_s13 = sshll.u32 %s3084_s3, 4  ;;  %s113_s26 = sshll.u32 %s3085_s25, 4  ;;  %s86_s13 = int_to_ptr.vmem [resolvable:$true] %s85_s13  ;;  %s3304_s26 = int_to_ptr.vmem [resolvable:$true] %s113_s26 }
  0x89   :  { %s2974_s0 = scalar_lea.hbm %s3691_s5, 1024 }
  0x8a   :  { %p2975_p6 = scmp.ne.s32.totalorder %s3691_s5, %s2974_s0  ;;  %p2978_p7 = scmp.lt.u32.totalorder %s2974_s0, %s3691_s5 }
  0x8c   :  { %p2980_p8 = pnand %p2978_p7, %p2975_p6 }
  0x8e   :  { %2983 = shalt.err (!%p2980_p8)
}
  0x8f   :  { %s2984_s28 = scalar_lea.vmem %s86_s13, 1024  ;;  %p2989_p10 = scmp.lt.s32.totalorder %s86_s13, %s86_s13 }
  0x90   :  { %p2985_p9 = scmp.ne.s32.totalorder %s86_s13, %s2984_s28  ;;  %p2990_p11 = scmp.lt.s32.totalorder %s2984_s28, %s2984_s28 }
  0x92   :  { %p2991_p12 = por %p2990_p11, %p2989_p10 }
  0x94   :  { %p2992_p13 = pnand %p2991_p12, %p2985_p9 }
  0x96   :  { %2995 = shalt.err (!%p2992_p13)
}
  0x97   :  { %s3729_s30 = smov 64   ;;  %s2996_s25 = scalar_lea.hbm %s3695_s9, 1024 }
  0x98   :  { %91 = dma.hbm_to_vmem [thread:$0]  %s3691_s5, 1024, %s86_s13, [#allocation9], %s3729_s30, %s3729_s30, %s3079_s2  }
  0x99   :  { %p2997_p0 = scmp.ne.s32.totalorder %s3695_s9, %s2996_s25  ;;  %p3000_p1 = scmp.lt.u32.totalorder %s2996_s25, %s3695_s9 }
  0x9b   :  { %p3002_p2 = pnand %p3000_p1, %p2997_p0 }
  0x9d   :  { %3005 = shalt.err (!%p3002_p2)
}
  0x9e   :  { %s3006_s18 = scalar_lea.vmem %s3304_s26, 1024  ;;  %p3011_p4 = scmp.lt.s32.totalorder %s3304_s26, %s3304_s26 }
  0x9f   :  { %p3007_p3 = scmp.ne.s32.totalorder %s3304_s26, %s3006_s18  ;;  %p3012_p5 = scmp.lt.s32.totalorder %s3006_s18, %s3006_s18 }
  0xa1   :  { %p3013_p6 = por %p3012_p5, %p3011_p4 }
  0xa3   :  { %p3014_p7 = pnand %p3013_p6, %p3007_p3 }
  0xa5   :  { %3017 = shalt.err (!%p3014_p7)
}
  0xa6   :  { %119 = dma.hbm_to_vmem [thread:$0]  %s3695_s9, 1024, %s3304_s26, [#allocation12], %s3729_s30, %s3729_s30, %s3079_s2  }
  0xa7   :  { %s3086_s1 = smov [#allocation16]   ;;  %s3018_s23 = scalar_lea.hbm %s3701_s15, 2048 }
  0xa8   :  { %s145_s24 = sshll.u32 %s3086_s1, 4  ;;  %p3019_p8 = scmp.ne.s32.totalorder %s3701_s15, %s3018_s23  ;;  %s146_s24 = int_to_ptr.vmem [resolvable:$true] %s145_s24 }
  0xa9   :  { %p3022_p9 = scmp.lt.u32.totalorder %s3018_s23, %s3701_s15 }
  0xab   :  { %p3024_p10 = pnand %p3022_p9, %p3019_p8 }
  0xad   :  { %3027 = shalt.err (!%p3024_p10)
}
  0xae   :  { %s3028_s21 = scalar_lea.vmem %s146_s24, 2048  ;;  %p3033_p12 = scmp.lt.s32.totalorder %s146_s24, %s146_s24 }
  0xaf   :  { %p3029_p11 = scmp.ne.s32.totalorder %s146_s24, %s3028_s21  ;;  %p3034_p13 = scmp.lt.s32.totalorder %s3028_s21, %s3028_s21 }
  0xb1   :  { %p3035_p0 = por %p3034_p13, %p3033_p12 }
  0xb3   :  { %p3036_p1 = pnand %p3035_p0, %p3029_p11 }
  0xb5   :  { %3039 = shalt.err (!%p3036_p1)
}
  0xb6   :  { %151 = dma.hbm_to_vmem [thread:$0]  %s3701_s15, 2048, %s146_s24, [#allocation15], %s3729_s30, %s3729_s30, %s3079_s2  }
  0xb7   :  { %3062 = dma.done.wait [#allocation3], 256  }
  0xb8   :  { %3063 = vsyncadd [#allocation3], 4294967040 }
  0xb9   :  { %3064 = dma.done.wait [#allocation6], 512  }
  0xba   :  { %3065 = vsyncadd [#allocation6], 4294966784 }
  0xbb   :  { %3066 = dma.done.wait [#allocation9], 2048  }
  0xbc   :  { %3067 = vsyncadd [#allocation9], 4294965248 }
  0xbd   :  { %3068 = dma.done.wait [#allocation12], 2048  }
  0xbe   :  { %3069 = vsyncadd [#allocation12], 4294965248 }
  0xbf   :  { %3070 = dma.done.wait [#allocation15], 4096  }
  0xc0   :  { %3071 = vsyncadd [#allocation15], 4294963200  ;;  %v3087_v0 = vmov 0.0   ;;  %vm3088_vm0 = vmmov 0   ;;  %v2729_v1 = vld [vmem:[#allocation10] sm:$0xff]   ;;  %v2730_v2 = vld [vmem:[#allocation10 + $0x8] sm:$0xff]  }
  0xc1   :  { %2510 = vmatprep.subr.bf16.mxu1 %v3087_v0  ;;  %2490 = vmatprep.subr.bf16.mxu0 %v3087_v0  ;;  %v2731_v3 = vld [vmem:[#allocation8] sm:$0xff]   ;;  %v2733_v4 = vld [vmem:[#allocation8 + $0x8] sm:$0xff]   ;;  %v2732_v5 = vld [vmem:[#allocation10 + $0x10] sm:$0xff]   ;;  %vm534_vm1 = vcmask 261120   ;;  %s3089_s18 = smov 96   ;;  %vm581_vm2 = vcmask 64512  }
  0xc2   :  { %2526 = vmatprep.mubr.msk.bf16.mxu1 %vm3088_vm0, %v3087_v0  ;;  %2506 = vmatprep.mubr.msk.bf16.mxu0 %vm3088_vm0, %v3087_v0  ;;  %v2735_v6 = vld [vmem:[#allocation8 + $0x10] sm:$0xff]   ;;  %v2734_v7 = vld [vmem:[#allocation10 + $0x18] sm:$0xff]   ;;  %v2736_v9 = vld [vmem:[#allocation10 + $0x20] sm:$0xff]   ;;  %vm597_vm3 = vcmask 1043456   ;;  %s3730_s3 = sld [smem:[#allocation28_spill]]  ;;  %s3092_s25 = smov [#allocation17]  }
  0xc3   :  { %2511 = vmatpush3.bf16.msra.mxu1 %v2729_v1  ;;  %2491 = vmatpush3.bf16.msra.mxu0 %v2731_v3  ;;  %v2737_v8 = vld [vmem:[#allocation8 + $0x18] sm:$0xff]   ;;  %v2739_v10 = vld [vmem:[#allocation8 + $0x20] sm:$0xff]   ;;  %v2738_v11 = vld [vmem:[#allocation10 + $0x28] sm:$0xff]   ;;  %s2272_s27 = sshll.u32 %s3092_s25, 4  ;;  %s2273_s27 = int_to_ptr.vmem [resolvable:$true] %s2272_s27 }
  0xc4   :  { %2512 = vmatprep.subr.bf16.mxu1 %v3087_v0  ;;  %2492 = vmatprep.subr.bf16.mxu0 %v3087_v0  ;;  %v2741_v12 = vld [vmem:[#allocation8 + $0x28] sm:$0xff]   ;;  %v2740_v13 = vld [vmem:[#allocation10 + $0x30] sm:$0xff]   ;;  %v2742_v15 = vld [vmem:[#allocation10 + $0x38] sm:$0xff]   ;;  %s3040_s21 = scalar_lea.vmem %s2273_s27, 256  ;;  %p3045_p3 = scmp.lt.s32.totalorder %s2273_s27, %s2273_s27 }
  0xc5   :  { %v2743_v14 = vld [vmem:[#allocation8 + $0x30] sm:$0xff]   ;;  %v188_v16 = vld [vmem:[#allocation5] sm:$0xff]  ;;  %v189_v17 = vld [vmem:[#allocation5 + $0x8] sm:$0xff]  ;;  %p3041_p2 = scmp.ne.s32.totalorder %s2273_s27, %s3040_s21  ;;  %p3046_p4 = scmp.lt.s32.totalorder %s3040_s21, %s3040_s21 }
  0xc6   :  { %v2744_v18 = vld [vmem:[#allocation8 + $0x38] sm:$0xff]   ;;  %v3374_v19 = vld [vmem:[#allocation2] sm:$0xff]  ;;  %v305_v21 = vpack.c.bf16 %v189_v17, %v188_v16  ;;  %v2745_v40 = vld [vmem:[#allocation11] sm:$0xff]  }
  0xc7   :  { %2513 = vmatpush3.bf16.msra.mxu1 %v2730_v2  ;;  %2493 = vmatpush3.bf16.msra.mxu0 %v2733_v4  ;;  %v187_v20 = vld [vmem:[#allocation2 + $0x8] sm:$0xff]  ;;  %v2297_v23 = vld [vmem:[%s3692_s6] ss:$0 sm:$0xff]  ;;  %v2746_v41 = vld [vmem:[#allocation11 + $0x8] sm:$0xff]   ;;  %p3047_p5 = por %p3046_p4, %p3045_p3 }
  0xc8   :  { %2514 = vmatprep.subr.bf16.mxu1 %v3087_v0  ;;  %2494 = vmatprep.subr.bf16.mxu0 %v3087_v0  ;;  %v192_v22 = vpack.c.bf16 %v187_v20, %v3374_v19  ;;  %v2288_v25 = vld [vmem:[%s3690_s4] ss:$0 sm:$0xff]  ;;  %v2748_v43 = vld [vmem:[#allocation11 + $0x18] sm:$0xff]   ;;  %v2749_v44 = vld [vmem:[#allocation11 + $0x20] sm:$0xff]  }
  0xc9   :  { %v2747_v42 = vld [vmem:[#allocation11 + $0x10] sm:$0xff]   ;;  %v2750_v45 = vld [vmem:[#allocation11 + $0x28] sm:$0xff]   ;;  %v2752_v47 = vld [vmem:[#allocation11 + $0x38] sm:$0xff]   ;;  %p3048_p6 = pnand %p3047_p5, %p3041_p2 }
  0xca   :  { %v2751_v46 = vld [vmem:[#allocation11 + $0x30] sm:$0xff]   ;;  %v191_v49 = vld [vmem:[#allocation7 + $0x8] sm:$0xff] }
  0xcb   :  { %2515 = vmatpush3.bf16.msra.mxu1 %v2732_v5  ;;  %2495 = vmatpush3.bf16.msra.mxu0 %v2735_v6  ;;  %v190_v48 = vld [vmem:[#allocation7] sm:$0xff] }
  0xcc   :  { %2516 = vmatprep.subr.bf16.mxu1 %v3087_v0  ;;  %2496 = vmatprep.subr.bf16.mxu0 %v3087_v0  ;;  %v418_v50 = vpack.c.bf16 %v191_v49, %v190_v48  ;;  %v2306_v63 = vld [vmem:[%s3694_s8] ss:$0 sm:$0xff]  ;;  %s3090_s8 = smov 32  }
  0xcf   :  { %2517 = vmatpush3.bf16.msra.mxu1 %v2734_v7  ;;  %2497 = vmatpush3.bf16.msra.mxu0 %v2737_v8 }
  0xd0   :  { %2518 = vmatprep.subr.bf16.mxu1 %v3087_v0  ;;  %2498 = vmatprep.subr.bf16.mxu0 %v3087_v0 }
  0xd3   :  { %2519 = vmatpush3.bf16.msra.mxu1 %v2736_v9  ;;  %2499 = vmatpush3.bf16.msra.mxu0 %v2739_v10 }
  0xd4   :  { %2520 = vmatprep.subr.bf16.mxu1 %v3087_v0  ;;  %2500 = vmatprep.subr.bf16.mxu0 %v3087_v0 }
  0xd7   :  { %2521 = vmatpush3.bf16.msra.mxu1 %v2738_v11  ;;  %2501 = vmatpush3.bf16.msra.mxu0 %v2741_v12 }
  0xd8   :  { %2522 = vmatprep.subr.bf16.mxu1 %v3087_v0  ;;  %2502 = vmatprep.subr.bf16.mxu0 %v3087_v0 }
  0xdb   :  { %2523 = vmatpush3.bf16.msra.mxu1 %v2740_v13  ;;  %2503 = vmatpush3.bf16.msra.mxu0 %v2743_v14 }
  0xdc   :  { %2524 = vmatprep.subr.bf16.mxu1 %v3087_v0  ;;  %2504 = vmatprep.subr.bf16.mxu0 %v3087_v0 }
  0xdf   :  { %2525 = vmatpush3.bf16.msra.mxu1 %v2742_v15  ;;  %2505 = vmatpush3.bf16.msra.mxu0 %v2744_v18 }
  0xe0   :  { %2550 = vmatprep.subr.bf16.mxu1 %v3087_v0  ;;  %2530 = vmatprep.subr.bf16.mxu0 %v3087_v0 }
  0xe2   :  { %2527 = vmatmul.mubr.bf16.vlgmr.msra.gmra.mrb[0].mxu1 %v305_v21  ;;  %2507 = vmatmul.mubr.bf16.vlgmr.msra.gmra.mrb[0].mxu0 %v192_v22 }
  0xe3   :  { %2552 = vmatprep.mubr.msk.bf16.mxu1 %vm3088_vm0, %v3087_v0  ;;  %2546 = vmatprep.mubr.msk.bf16.mxu0 %vm3088_vm0, %v3087_v0 }
  0xe4   :  { %2531 = vmatpush3.bf16.msra.mxu0 %v2745_v40  ;;  %v3460_v40 = vld [vmem:[#allocation13] sm:$0xff]  }
  0xe5   :  { %2532 = vmatprep.subr.bf16.mxu0 %v3087_v0 }
  0xe8   :  { %2533 = vmatpush3.bf16.msra.mxu0 %v2746_v41 }
  0xe9   :  { %2534 = vmatprep.subr.bf16.mxu0 %v3087_v0 }
  0xec   :  { %2535 = vmatpush3.bf16.msra.mxu0 %v2747_v42  ;;  %v3464_v42 = vld [vmem:[#allocation13 + $0x8] sm:$0xff]  }
  0xed   :  { %2536 = vmatprep.subr.bf16.mxu0 %v3087_v0 }
  0xf0   :  { %2537 = vmatpush3.bf16.msra.mxu0 %v2748_v43 }
  0xf1   :  { %2538 = vmatprep.subr.bf16.mxu0 %v3087_v0 }
  0xf4   :  { %2539 = vmatpush3.bf16.msra.mxu0 %v2749_v44 }
  0xf5   :  { %2540 = vmatprep.subr.bf16.mxu0 %v3087_v0 }
  0xf8   :  { %2541 = vmatpush3.bf16.msra.mxu0 %v2750_v45 }
  0xf9   :  { %2542 = vmatprep.subr.bf16.mxu0 %v3087_v0 }
  0xfc   :  { %2543 = vmatpush3.bf16.msra.mxu0 %v2751_v46 }
  0xfd   :  { %2544 = vmatprep.subr.bf16.mxu0 %v3087_v0 }
 0x100   :  { %2545 = vmatpush3.bf16.msra.mxu0 %v2752_v47 }
 0x101   :  { %2574 = vmatprep.subr.bf16.mxu0 %v3087_v0 }
 0x103   :  { %2547 = vmatmul.mubr.bf16.vlgmr.msra.gmra.mrb[4].mxu0 %v418_v50 }
 0x104   :  { %2578 = vmatprep.mubr.msk.bf16.mxu0 %vm3088_vm0, %v3087_v0 }
 0x1b5   :  { %v411_v24 = vpop.f32.mrb[0].mxu1  ;;  %v298_v29 = vpop.f32.mrb[0].mxu0 }
 0x1b6   :  { %v412_v26 = vadd.f32 %v2297_v23, %v411_v24  ;;  %v2528_v27 = vpop.f32.mrb[1].mxu1  ;;  %v299_v33 = vadd.f32 %v2288_v25, %v298_v29  ;;  %v2508_v34 = vpop.f32.mrb[1].mxu0 }
 0x1b7   :  { %v414_v28 = vpop.f32.mrb[2].mxu1  ;;  %v301_v35 = vpop.f32.mrb[2].mxu0  ;;  %v3455_v34 = vld [vmem:[#allocation13 + $0x18] sm:$0xff]  }
 0x1b8   :  { %v3391_v30 = vpack.c.bf16 %v412_v26, %v412_v26  ;;  %v3393_v31 = vadd.f32 %v2297_v23, %v414_v28  ;;  %v2529_v32 = vpop.f32.mrb[3].mxu1  ;;  %v3397_v36 = vpack.c.bf16 %v299_v33, %v299_v33  ;;  %v3401_v38 = vadd.f32 %v2288_v25, %v301_v35  ;;  %v2509_v39 = vpop.f32.mrb[3].mxu0  ;;  %v3452_v33 = vld [vmem:[#allocation13 + $0x10] sm:$0xff]  }
 0x1b9   :  { %2575 = vmatpush3.bf16.msra.mxu0 %v3452_v33 }
 0x1ba   :  { %650 = vrot.lane.b32.xlu1 %v3391_v30, %s3089_s18  ;;  %v539_v37 = vsel %vm534_vm1, %v3391_v30, 0  ;;  %2576 = vmatprep.subr.bf16.mxu0 %v3087_v0 }
 0x1bb   :  { %2551 = vmatpush3.bf16.xpose.msra.mxu1 %v539_v37 }
 0x1bc   :  { %2556 = vmatprep.subr.bf16.mxu1 %v3087_v0 }
 0x1bd   :  { %2577 = vmatpush3.bf16.msra.mxu0 %v3455_v34 }
 0x1be   :  { %647 = vrot.lane.b32.xlu1 %v3397_v36, %s3089_s18  ;;  %2590 = vmatprep.subr.bf16.mxu0 %v3087_v0 }
 0x1c2   :  { %2553 = vmatmul.mubr.msk.bf16.vlgmr.msra.gmra.mrb[4].mxu1 %vm534_vm1, %v3397_v36 }
 0x1c3   :  { %2558 = vmatprep.mubr.msk.bf16.mxu1 %vm3088_vm0, %v3087_v0 }
 0x1d6   :  { %v524_v56 = vpop.f32.mrb[4].mxu0 }
 0x1d7   :  { %v2548_v57 = vpop.f32.mrb[5].mxu0  ;;  %v525_v1 = vadd.f32 %v2306_v63, %v524_v56 }
 0x1d8   :  { %v527_v2 = vpop.f32.mrb[6].mxu0 }
 0x1d9   :  { %v3425_v3 = vpack.c.bf16 %v525_v1, %v525_v1  ;;  %v2549_v4 = vpop.f32.mrb[7].mxu0  ;;  %v3427_v5 = vadd.f32 %v2306_v63, %v527_v2 }
 0x1db   :  { %v599_v6 = vsel %vm597_vm3, %v3425_v3, 0 }
 0x1dc   :  { %2557 = vmatpush3.bf16.msra.mxu1 %v599_v6 }
 0x1dd   :  { %2562 = vmatprep.subr.bf16.mxu1 %v3087_v0 }
 0x22c   :  { %v651_v10 = vpop.permute.xlu1 %650 }
 0x22d   :  { %v656_v12 = vsel %vm534_vm1, %v651_v10, 0 }
 0x230   :  { %v648_v13 = vpop.permute.xlu1 %647 }
 0x295   :  { %v575_v51 = vpop.f32.mrb[4].mxu1 }
 0x296   :  { %v2554_v52 = vpop.f32.mrb[5].mxu1  ;;  %v582_v53 = vsel %vm581_vm2, %v575_v51, -inf }
 0x297   :  { %583 = vmax.xlane.f32.xlu0 %v582_v53  ;;  %v578_v54 = vpop.f32.mrb[6].mxu1 }
 0x298   :  { %v2555_v55 = vpop.f32.mrb[7].mxu1 }
 0x324   :  { %v584_v58 = vpop.xlane.xlu0 %583 }
 0x325   :  { %v585_v59 = vsub.f32 %v575_v51, %v584_v58 }
 0x327   :  { %v586_v60 = vmul.f32 1.442695, %v585_v59 }
 0x329   :  { %2801 = vpow2.f32 %v586_v60 }
 0x333   :  { %v2802_v61 = vpop.eup %2801 }
 0x334   :  { %v588_v62 = vsel %vm581_vm2, %v2802_v61, 0.0 }
 0x335   :  { %589 = vadd.xlane.f32.xlu0 %v588_v62 }
 0x3c2   :  { %v590_v7 = vpop.xlane.xlu0 %589 }
 0x3c3   :  { %2803 = vrcp.f32 %v590_v7 }
 0x3cd   :  { %v2804_v8 = vpop.eup %2803 }
 0x3ce   :  { %v592_v9 = vmul.f32 %v2804_v8, %v2802_v61 }
 0x3d0   :  { %v593_v11 = vpack.c.bf16 %v592_v9, %v592_v9 }
 0x3d2   :  { %2559 = vmatmul.mubr.msk.bf16.vlgmr.msra.gmra.mrb[8].mxu1 %vm581_vm2, %v593_v11 }
 0x3d3   :  { %2563 = vmatpush3.bf16.xpose.msra.mxu1 %v656_v12  ;;  %2564 = vmatprep.mubr.msk.bf16.mxu1 %vm3088_vm0, %v3087_v0  ;;  %v3492_v12 = vld [vmem:[#allocation13 + $0x20] sm:$0xff]  }
 0x3d4   :  { %2568 = vmatprep.subr.bf16.mxu1 %v3087_v0 }
 0x3da   :  { %2565 = vmatmul.mubr.msk.bf16.vlgmr.msra.gmra.mrb[12].mxu1 %vm534_vm1, %v648_v13 }
 0x3db   :  { %2570 = vmatprep.mubr.msk.bf16.mxu1 %vm3088_vm0, %v3087_v0 }
 0x4a5   :  { %v635_v14 = vpop.f32.mrb[8].mxu1 }
 0x4a6   :  { %v2560_v15 = vpop.f32.mrb[9].mxu1  ;;  %v641_v44 = vpack.c.bf16 %v635_v14, %v635_v14 }
 0x4a7   :  { %v638_v16 = vpop.f32.mrb[10].mxu1 }
 0x4a8   :  { %v2561_v17 = vpop.f32.mrb[11].mxu1 }
 0x4ad   :  { %v692_v18 = vpop.f32.mrb[12].mxu1 }
 0x4ae   :  { %v2566_v20 = vpop.f32.mrb[13].mxu1  ;;  %v698_v21 = vsel %vm581_vm2, %v692_v18, -inf }
 0x4af   :  { %699 = vmax.xlane.f32.xlu0 %v698_v21  ;;  %v695_v22 = vpop.f32.mrb[14].mxu1 }
 0x4b0   :  { %v2567_v23 = vpop.f32.mrb[15].mxu1 }
 0x4c5   :  { %711 = vrot.lane.b32.xlu0 %v3425_v3, %s3089_s18 }
 0x4c9   :  { %877 = vrot.lane.b32.xlu0 %v3391_v30, %s3729_s30 }
 0x4cd   :  { %875 = vrot.lane.b32.xlu0 %v3397_v36, %s3729_s30 }
 0x53c   :  { %v700_v24 = vpop.xlane.xlu0 %699 }
 0x53d   :  { %v701_v25 = vsub.f32 %v692_v18, %v700_v24 }
 0x53f   :  { %v702_v26 = vmul.f32 1.442695, %v701_v25 }
 0x540   :  { %v712_v27 = vpop.permute.xlu0 %711 }
 0x541   :  { %2805 = vpow2.f32 %v702_v26  ;;  %v717_v28 = vsel %vm597_vm3, %v712_v27, 0 }
 0x542   :  { %2569 = vmatpush3.bf16.msra.mxu1 %v717_v28 }
 0x543   :  { %2582 = vmatprep.subr.bf16.mxu1 %v3087_v0 }
 0x544   :  { %v878_v46 = vpop.permute.xlu0 %877 }
 0x545   :  { %v883_v51 = vsel %vm534_vm1, %v878_v46, 0 }
 0x548   :  { %v876_v55 = vpop.permute.xlu0 %875 }
 0x54b   :  { %v2806_v29 = vpop.eup %2805 }
 0x54c   :  { %v704_v32 = vsel %vm581_vm2, %v2806_v29, 0.0 }
 0x54d   :  { %705 = vadd.xlane.f32.xlu1 %v704_v32  ;;  %v3516_v32 = vpack.c.bf16 %v3393_v31, %v3393_v31 }
 0x55e   :  { %937 = vrot.lane.b32.xlu1 %v3425_v3, %s3729_s30 }
 0x5da   :  { %v706_v35 = vpop.xlane.xlu1 %705 }
 0x5db   :  { %2807 = vrcp.f32 %v706_v35  ;;  %v3522_v35 = vpack.c.bf16 %v3401_v38, %v3401_v38 }
 0x5de   :  { %v938_v43 = vpop.permute.xlu1 %937 }
 0x5df   :  { %v943_v45 = vsel %vm597_vm3, %v938_v43, 0 }
 0x5e5   :  { %v2808_v37 = vpop.eup %2807 }
 0x5e6   :  { %v708_v39 = vmul.f32 %v2808_v37, %v2806_v29 }
 0x5e8   :  { %v709_v41 = vpack.c.bf16 %v708_v39, %v708_v39 }
 0x5ea   :  { %2571 = vmatmul.mubr.msk.bf16.vlgmr.msra.gmra.mrb[16].mxu1 %vm581_vm2, %v709_v41 }
 0x5eb   :  { %2583 = vmatpush3.bf16.msra.mxu1 %v3460_v40  ;;  %2586 = vmatprep.mubr.msk.bf16.mxu1 %vm3088_vm0, %v3087_v0 }
 0x5ec   :  { %2584 = vmatprep.subr.bf16.mxu1 %v3087_v0 }
 0x5ef   :  { %2585 = vmatpush3.bf16.msra.mxu1 %v3464_v42 }
 0x5f0   :  { %2596 = vmatprep.subr.bf16.mxu1 %v3087_v0 }
 0x5f2   :  { %2587 = vmatmul.mubr.msk.bf16.vlgmr.msra.gmra.mrb[20].mxu1 %vm534_vm1, %v641_v44 }
 0x5f3   :  { %2597 = vmatpush3.bf16.msra.mxu1 %v943_v45  ;;  %2598 = vmatprep.mubr.msk.bf16.mxu1 %vm3088_vm0, %v3087_v0  ;;  %v3529_v45 = vld [vmem:[#allocation13 + $0x30] sm:$0xff]  }
 0x5f4   :  { %2610 = vmatprep.subr.bf16.mxu1 %v3087_v0 }
 0x6bd   :  { %v753_v47 = vpop.f32.mrb[16].mxu1 }
 0x6be   :  { %v759_v48 = vpack.c.bf16 %v753_v47, %v753_v47  ;;  %v2572_v49 = vpop.f32.mrb[17].mxu1 }
 0x6bf   :  { %v756_v50 = vpop.f32.mrb[18].mxu1 }
 0x6c0   :  { %v2573_v52 = vpop.f32.mrb[19].mxu1  ;;  %2579 = vmatmul.mubr.msk.bf16.vlgmr.msra.gmra.mrb[8].mxu0 %vm534_vm1, %v759_v48  ;;  %v3535_v48 = vld [vmem:[#allocation13 + $0x38] sm:$0xff]  }
 0x6c1   :  { %2591 = vmatpush3.bf16.xpose.msra.mxu0 %v883_v51  ;;  %2592 = vmatprep.mubr.msk.bf16.mxu0 %vm3088_vm0, %v3087_v0 }
 0x6c2   :  { %2602 = vmatprep.subr.bf16.mxu0 %v3087_v0 }
 0x6c5   :  { %v869_v53 = vpop.f32.mrb[20].mxu1 }
 0x6c6   :  { %v2588_v54 = vpop.f32.mrb[21].mxu1 }
 0x6c7   :  { %v872_v56 = vpop.f32.mrb[22].mxu1 }
 0x6c8   :  { %v2589_v57 = vpop.f32.mrb[23].mxu1  ;;  %2593 = vmatmul.mubr.msk.bf16.vlgmr.msra.gmra.mrb[12].mxu0 %vm534_vm1, %v876_v55  ;;  %v1226_v55 = vsel %vm534_vm1, %v3516_v32, 0 }
 0x6c9   :  { %2606 = vmatprep.mubr.msk.bf16.mxu0 %vm3088_vm0, %v3087_v0  ;;  %2603 = vmatpush3.bf16.msra.mxu0 %v3492_v12 }
 0x6ca   :  { %2604 = vmatprep.subr.bf16.mxu0 %v3087_v0 }
 0x793   :  { %v814_v58 = vpop.f32.mrb[8].mxu0 }
 0x794   :  { %v3484_v59 = vadd.f32 %v869_v53, %v814_v58  ;;  %v2580_v60 = vpop.f32.mrb[9].mxu0 }
 0x795   :  { %v817_v61 = vpop.f32.mrb[10].mxu0 }
 0x796   :  { %v2581_v62 = vpop.f32.mrb[11].mxu0 }
 0x79b   :  { %v919_v63 = vpop.f32.mrb[12].mxu0 }
 0x79c   :  { %v2594_v1 = vpop.f32.mrb[13].mxu0  ;;  %v925_v2 = vsel %vm581_vm2, %v919_v63, -inf }
 0x79d   :  { %926 = vmax.xlane.f32.xlu0 %v925_v2  ;;  %v922_v4 = vpop.f32.mrb[14].mxu0 }
 0x79e   :  { %v2595_v6 = vpop.f32.mrb[15].mxu0 }
 0x82a   :  { %v927_v7 = vpop.xlane.xlu0 %926 }
 0x82b   :  { %v928_v8 = vsub.f32 %v919_v63, %v927_v7 }
 0x82d   :  { %v929_v9 = vmul.f32 1.442695, %v928_v8 }
 0x82f   :  { %2809 = vpow2.f32 %v929_v9 }
 0x839   :  { %v2810_v10 = vpop.eup %2809 }
 0x83a   :  { %v931_v11 = vsel %vm581_vm2, %v2810_v10, 0.0 }
 0x83b   :  { %932 = vadd.xlane.f32.xlu1 %v931_v11 }
 0x84c   :  { %1049 = vrot.lane.b32.xlu1 %v3391_v30, %s3090_s8 }
 0x850   :  { %1047 = vrot.lane.b32.xlu1 %v3397_v36, %s3090_s8  ;;  %v3504_v36 = vld [vmem:[#allocation13 + $0x28] sm:$0xff]  }
 0x851   :  { %2605 = vmatpush3.bf16.msra.mxu0 %v3504_v36 }
 0x852   :  { %2616 = vmatprep.subr.bf16.mxu0 %v3087_v0 }
 0x8c8   :  { %v933_v13 = vpop.xlane.xlu1 %932 }
 0x8c9   :  { %2811 = vrcp.f32 %v933_v13 }
 0x8cc   :  { %v1050_v16 = vpop.permute.xlu1 %1049 }
 0x8cd   :  { %v1055_v18 = vsel %vm534_vm1, %v1050_v16, 0 }
 0x8d0   :  { %v1048_v30 = vpop.permute.xlu1 %1047 }
 0x8d3   :  { %v2812_v14 = vpop.eup %2811 }
 0x8d4   :  { %v935_v15 = vmul.f32 %v2812_v14, %v2810_v10 }
 0x8d6   :  { %v936_v17 = vpack.c.bf16 %v935_v15, %v935_v15 }
 0x8d8   :  { %2599 = vmatmul.mubr.msk.bf16.vlgmr.msra.gmra.mrb[24].mxu1 %vm581_vm2, %v936_v17 }
 0x8d9   :  { %2611 = vmatpush3.bf16.xpose.msra.mxu1 %v1055_v18  ;;  %2612 = vmatprep.mubr.msk.bf16.mxu1 %vm3088_vm0, %v3087_v0 }
 0x8da   :  { %2622 = vmatprep.subr.bf16.mxu1 %v3087_v0 }
 0x8e0   :  { %2613 = vmatmul.mubr.msk.bf16.vlgmr.msra.gmra.mrb[28].mxu1 %vm534_vm1, %v1048_v30 }
 0x8e1   :  { %2626 = vmatprep.mubr.msk.bf16.mxu1 %vm3088_vm0, %v3087_v0  ;;  %2623 = vmatpush3.bf16.msra.mxu1 %v3529_v45 }
 0x8e2   :  { %2624 = vmatprep.subr.bf16.mxu1 %v3087_v0 }
 0x8e5   :  { %2625 = vmatpush3.bf16.msra.mxu1 %v3535_v48 }
 0x8e6   :  { %2636 = vmatprep.subr.bf16.mxu1 %v3087_v0 }
 0x9ab   :  { %v979_v20 = vpop.f32.mrb[24].mxu1 }
 0x9ac   :  { %v985_v21 = vpack.c.bf16 %v979_v20, %v979_v20  ;;  %v2600_v22 = vpop.f32.mrb[25].mxu1 }
 0x9ad   :  { %v982_v23 = vpop.f32.mrb[26].mxu1 }
 0x9ae   :  { %v2601_v24 = vpop.f32.mrb[27].mxu1  ;;  %2607 = vmatmul.mubr.msk.bf16.vlgmr.msra.gmra.mrb[16].mxu0 %vm534_vm1, %v985_v21 }
 0x9af   :  { %2618 = vmatprep.mubr.msk.bf16.mxu0 %vm3088_vm0, %v3087_v0 }
 0x9b3   :  { %v1091_v25 = vpop.f32.mrb[28].mxu1 }
 0x9b4   :  { %v2614_v26 = vpop.f32.mrb[29].mxu1  ;;  %v1097_v27 = vsel %vm581_vm2, %v1091_v25, -inf }
 0x9b5   :  { %1098 = vmax.xlane.f32.xlu0 %v1097_v27  ;;  %v1094_v28 = vpop.f32.mrb[30].mxu1 }
 0x9b6   :  { %v2615_v29 = vpop.f32.mrb[31].mxu1 }
 0x9cb   :  { %1109 = vrot.lane.b32.xlu0 %v3425_v3, %s3090_s8 }
 0x9cf   :  { %1331 = vrot.lane.b32.xlu0 %v3516_v32, %s3089_s18 }
 0x9d3   :  { %1328 = vrot.lane.b32.xlu0 %v3522_v35, %s3089_s18 }
 0xa42   :  { %v1099_v37 = vpop.xlane.xlu0 %1098 }
 0xa43   :  { %v1100_v39 = vsub.f32 %v1091_v25, %v1099_v37 }
 0xa45   :  { %v1101_v41 = vmul.f32 1.442695, %v1100_v39 }
 0xa46   :  { %v1110_v43 = vpop.permute.xlu0 %1109 }
 0xa47   :  { %2813 = vpow2.f32 %v1101_v41  ;;  %v1115_v3 = vsel %vm597_vm3, %v1110_v43, 0 }
 0xa48   :  { %2617 = vmatpush3.bf16.msra.mxu0 %v1115_v3 }
 0xa49   :  { %2630 = vmatprep.subr.bf16.mxu0 %v3087_v0 }
 0xa4a   :  { %v1332_v56 = vpop.permute.xlu0 %1331 }
 0xa4b   :  { %v1337_v57 = vsel %vm534_vm1, %v1332_v56, 0 }
 0xa4e   :  { %v1329_v58 = vpop.permute.xlu0 %1328 }
 0xa51   :  { %v2814_v31 = vpop.eup %2813 }
 0xa52   :  { %v1103_v44 = vsel %vm581_vm2, %v2814_v31, 0.0 }
 0xa53   :  { %1104 = vadd.xlane.f32.xlu1 %v1103_v44 }
 0xa81   :  { %v1040_v38 = vpop.f32.mrb[16].mxu0 }
 0xa82   :  { %v3532_v46 = vadd.f32 %v1040_v38, %v3484_v59  ;;  %v2608_v47 = vpop.f32.mrb[17].mxu0  ;;  %v3561_v59 = vpack.c.bf16 %v3427_v5, %v3427_v5 }
 0xa83   :  { %v1043_v49 = vpop.f32.mrb[18].mxu0 }
 0xa84   :  { %v2609_v50 = vpop.f32.mrb[19].mxu0 }
 0xae0   :  { %v1105_v51 = vpop.xlane.xlu1 %1104 }
 0xae1   :  { %2815 = vrcp.f32 %v1105_v51 }
 0xaeb   :  { %v2816_v52 = vpop.eup %2815 }
 0xaec   :  { %v1107_v53 = vmul.f32 %v2816_v52, %v2814_v31 }
 0xaee   :  { %v1108_v54 = vpack.c.bf16 %v1107_v53, %v1107_v53 }
 0xaf0   :  { %2619 = vmatmul.mubr.msk.bf16.vlgmr.msra.gmra.mrb[20].mxu0 %vm581_vm2, %v1108_v54 }
 0xaf1   :  { %2631 = vmatpush3.bf16.xpose.msra.mxu0 %v1226_v55  ;;  %2632 = vmatprep.mubr.msk.bf16.mxu0 %vm3088_vm0, %v3087_v0 }
 0xaf2   :  { %2642 = vmatprep.subr.bf16.mxu0 %v3087_v0 }
 0xaf8   :  { %2633 = vmatmul.mubr.msk.bf16.vlgmr.msra.gmra.mrb[24].mxu0 %vm534_vm1, %v3522_v35 }
 0xaf9   :  { %2643 = vmatpush3.bf16.xpose.msra.mxu0 %v1337_v57  ;;  %2644 = vmatprep.mubr.msk.bf16.mxu0 %vm3088_vm0, %v3087_v0 }
 0xafa   :  { %2654 = vmatprep.subr.bf16.mxu0 %v3087_v0 }
 0xb00   :  { %2645 = vmatmul.mubr.msk.bf16.vlgmr.msra.gmra.mrb[28].mxu0 %vm534_vm1, %v1329_v58 }
 0xb01   :  { %2655 = vmatpush3.bf16.msra.mxu0 %v3452_v33  ;;  %2658 = vmatprep.mubr.msk.bf16.mxu0 %vm3088_vm0, %v3087_v0  ;;  %v1284_v33 = vsel %vm597_vm3, %v3561_v59, 0 }
 0xb02   :  { %2656 = vmatprep.subr.bf16.mxu0 %v3087_v0 }
 0xb05   :  { %2657 = vmatpush3.bf16.msra.mxu0 %v3455_v34 }
 0xb06   :  { %2670 = vmatprep.subr.bf16.mxu0 %v3087_v0 }
 0xbc3   :  { %v1151_v60 = vpop.f32.mrb[20].mxu0 }
 0xbc4   :  { %v1157_v61 = vpack.c.bf16 %v1151_v60, %v1151_v60  ;;  %v2620_v62 = vpop.f32.mrb[21].mxu0 }
 0xbc5   :  { %v1154_v63 = vpop.f32.mrb[22].mxu0 }
 0xbc6   :  { %v2621_v1 = vpop.f32.mrb[23].mxu0  ;;  %2627 = vmatmul.mubr.msk.bf16.vlgmr.msra.gmra.mrb[32].mxu1 %vm534_vm1, %v1157_v61 }
 0xbc7   :  { %2637 = vmatpush3.bf16.msra.mxu1 %v1284_v33  ;;  %2638 = vmatprep.mubr.msk.bf16.mxu1 %vm3088_vm0, %v3087_v0 }
 0xbc8   :  { %2648 = vmatprep.subr.bf16.mxu1 %v3087_v0 }
 0xbcb   :  { %v1262_v34 = vpop.f32.mrb[24].mxu0 }
 0xbcc   :  { %v2634_v2 = vpop.f32.mrb[25].mxu0  ;;  %v1268_v5 = vsel %vm581_vm2, %v1262_v34, -inf }
 0xbcd   :  { %1269 = vmax.xlane.f32.xlu0 %v1268_v5  ;;  %v1265_v4 = vpop.f32.mrb[26].mxu0 }
 0xbce   :  { %v2635_v6 = vpop.f32.mrb[27].mxu0 }
 0xbd3   :  { %v1373_v7 = vpop.f32.mrb[28].mxu0 }
 0xbd4   :  { %v2646_v8 = vpop.f32.mrb[29].mxu0  ;;  %v1379_v9 = vsel %vm581_vm2, %v1373_v7, -inf }
 0xbd5   :  { %1380 = vmax.xlane.f32.xlu1 %v1379_v9  ;;  %v1376_v10 = vpop.f32.mrb[30].mxu0 }
 0xbd6   :  { %v2647_v11 = vpop.f32.mrb[31].mxu0 }
 0xbe3   :  { %1529 = vrot.lane.b32.xlu0 %v3516_v32, %s3729_s30 }
 0xc5a   :  { %v1270_v13 = vpop.xlane.xlu0 %1269 }
 0xc5b   :  { %v1271_v14 = vsub.f32 %v1262_v34, %v1270_v13 }
 0xc5d   :  { %v1272_v15 = vmul.f32 1.442695, %v1271_v14 }
 0xc5f   :  { %2817 = vpow2.f32 %v1272_v15 }
 0xc62   :  { %v1381_v16 = vpop.xlane.xlu1 %1380 }
 0xc63   :  { %v1382_v17 = vsub.f32 %v1373_v7, %v1381_v16 }
 0xc65   :  { %v1383_v18 = vmul.f32 1.442695, %v1382_v17 }
 0xc67   :  { %2819 = vpow2.f32 %v1383_v18 }
 0xc69   :  { %v2818_v30 = vpop.eup %2817 }
 0xc6a   :  { %v1274_v20 = vsel %vm581_vm2, %v2818_v30, 0.0 }
 0xc6b   :  { %1275 = vadd.xlane.f32.xlu1 %v1274_v20 }
 0xc71   :  { %v2820_v21 = vpop.eup %2819 }
 0xc72   :  { %v1385_v22 = vsel %vm581_vm2, %v2820_v21, 0.0 }
 0xc73   :  { %1386 = vadd.xlane.f32.xlu1 %v1385_v22 }
 0xc84   :  { %1392 = vrot.lane.b32.xlu1 %v3561_v59, %s3089_s18 }
 0xc88   :  { %1527 = vrot.lane.b32.xlu1 %v3522_v35, %s3729_s30 }
 0xc99   :  { %v1212_v23 = vpop.f32.mrb[32].mxu1 }
 0xc9a   :  { %v3580_v24 = vadd.f32 %v1212_v23, %v3532_v46  ;;  %v2628_v25 = vpop.f32.mrb[33].mxu1 }
 0xc9b   :  { %v1215_v26 = vpop.f32.mrb[34].mxu1 }
 0xc9c   :  { %v2629_v27 = vpop.f32.mrb[35].mxu1 }
 0xcf8   :  { %v1276_v28 = vpop.xlane.xlu1 %1275 }
 0xcf9   :  { %2821 = vrcp.f32 %v1276_v28 }
 0xd00   :  { %v1387_v29 = vpop.xlane.xlu1 %1386 }
 0xd01   :  { %2823 = vrcp.f32 %v1387_v29 }
 0xd03   :  { %v2822_v37 = vpop.eup %2821 }
 0xd04   :  { %v1278_v39 = vmul.f32 %v2822_v37, %v2818_v30  ;;  %v1393_v41 = vpop.permute.xlu1 %1392 }
 0xd05   :  { %v1398_v3 = vsel %vm597_vm3, %v1393_v41, 0 }
 0xd06   :  { %v1279_v43 = vpack.c.bf16 %v1278_v39, %v1278_v39 }
 0xd08   :  { %2639 = vmatmul.mubr.msk.bf16.vlgmr.msra.gmra.mrb[36].mxu1 %vm581_vm2, %v1279_v43  ;;  %v1528_v57 = vpop.permute.xlu1 %1527 }
 0xd09   :  { %2649 = vmatpush3.bf16.msra.mxu1 %v1398_v3  ;;  %2650 = vmatprep.mubr.msk.bf16.mxu1 %vm3088_vm0, %v3087_v0 }
 0xd0a   :  { %2662 = vmatprep.subr.bf16.mxu1 %v3087_v0 }
 0xd0b   :  { %v2824_v31 = vpop.eup %2823 }
 0xd0c   :  { %v1389_v44 = vmul.f32 %v2824_v31, %v2820_v21 }
 0xd0e   :  { %v1390_v38 = vpack.c.bf16 %v1389_v44, %v1389_v44 }
 0xd10   :  { %2651 = vmatmul.mubr.msk.bf16.vlgmr.msra.gmra.mrb[40].mxu1 %vm581_vm2, %v1390_v38 }
 0xd11   :  { %2663 = vmatpush3.bf16.msra.mxu1 %v3460_v40  ;;  %2666 = vmatprep.mubr.msk.bf16.mxu1 %vm3088_vm0, %v3087_v0  ;;  %v1530_v40 = vpop.permute.xlu0 %1529 }
 0xd12   :  { %2664 = vmatprep.subr.bf16.mxu1 %v3087_v0  ;;  %v1535_v56 = vsel %vm534_vm1, %v1530_v40, 0 }
 0xd15   :  { %2665 = vmatpush3.bf16.msra.mxu1 %v3464_v42 }
 0xd16   :  { %2676 = vmatprep.subr.bf16.mxu1 %v3087_v0 }
 0xddb   :  { %v1320_v46 = vpop.f32.mrb[36].mxu1 }
 0xddc   :  { %v1326_v47 = vpack.c.bf16 %v1320_v46, %v1320_v46  ;;  %v2640_v49 = vpop.f32.mrb[37].mxu1 }
 0xddd   :  { %v1323_v50 = vpop.f32.mrb[38].mxu1 }
 0xdde   :  { %v2641_v51 = vpop.f32.mrb[39].mxu1  ;;  %2667 = vmatmul.mubr.msk.bf16.vlgmr.msra.gmra.mrb[44].mxu1 %vm534_vm1, %v1326_v47 }
 0xddf   :  { %2678 = vmatprep.mubr.msk.bf16.mxu1 %vm3088_vm0, %v3087_v0 }
 0xde3   :  { %v1434_v52 = vpop.f32.mrb[40].mxu1 }
 0xde4   :  { %v1440_v53 = vpack.c.bf16 %v1434_v52, %v1434_v52  ;;  %v2652_v54 = vpop.f32.mrb[41].mxu1 }
 0xde5   :  { %v1437_v55 = vpop.f32.mrb[42].mxu1 }
 0xde6   :  { %v2653_v42 = vpop.f32.mrb[43].mxu1  ;;  %2659 = vmatmul.mubr.msk.bf16.vlgmr.msra.gmra.mrb[32].mxu0 %vm534_vm1, %v1440_v53 }
 0xde7   :  { %2671 = vmatpush3.bf16.xpose.msra.mxu0 %v1535_v56  ;;  %2672 = vmatprep.mubr.msk.bf16.mxu0 %vm3088_vm0, %v3087_v0 }
 0xde8   :  { %2682 = vmatprep.subr.bf16.mxu0 %v3087_v0 }
 0xdee   :  { %2673 = vmatmul.mubr.msk.bf16.vlgmr.msra.gmra.mrb[36].mxu0 %vm534_vm1, %v1528_v57 }
 0xdef   :  { %2683 = vmatpush3.bf16.msra.mxu0 %v3492_v12  ;;  %2686 = vmatprep.mubr.msk.bf16.mxu0 %vm3088_vm0, %v3087_v0 }
 0xdf0   :  { %2684 = vmatprep.subr.bf16.mxu0 %v3087_v0 }
 0xdf3   :  { %2685 = vmatpush3.bf16.msra.mxu0 %v3504_v36 }
 0xdf4   :  { %2696 = vmatprep.subr.bf16.mxu0 %v3087_v0 }
 0xeb1   :  { %v1521_v58 = vpop.f32.mrb[44].mxu1 }
 0xeb2   :  { %v2668_v60 = vpop.f32.mrb[45].mxu1 }
 0xeb3   :  { %v1524_v61 = vpop.f32.mrb[46].mxu1 }
 0xeb4   :  { %v2669_v62 = vpop.f32.mrb[47].mxu1 }
 0xeb9   :  { %v1478_v63 = vpop.f32.mrb[32].mxu0 }
 0xeba   :  { %v3609_v1 = vadd.f32 %v1521_v58, %v1478_v63  ;;  %v2660_v33 = vpop.f32.mrb[33].mxu0 }
 0xebb   :  { %v1481_v34 = vpop.f32.mrb[34].mxu0 }
 0xebc   :  { %v2661_v2 = vpop.f32.mrb[35].mxu0  ;;  %v2841_v34 = vld [vmem:[#allocation2 + $0x8] sm:$0xff] }
 0xec1   :  { %v1571_v12 = vpop.f32.mrb[36].mxu0 }
 0xec2   :  { %v2674_v5 = vpop.f32.mrb[37].mxu0  ;;  %v1577_v4 = vsel %vm581_vm2, %v1571_v12, -inf }
 0xec3   :  { %1578 = vmax.xlane.f32.xlu1 %v1577_v4  ;;  %v1574_v6 = vpop.f32.mrb[38].mxu0  ;;  %v2761_v5 = vld [vmem:[#allocation14] ss:$8 sps:$4 sm:$0xff]   ;;  %v2763_v4 = vld [vmem:[#allocation14 + $0x4] ss:$8 sps:$4 sm:$0xff]  }
 0xec4   :  { %v2675_v7 = vpop.f32.mrb[39].mxu0  ;;  %v2766_v6 = vld [vmem:[#allocation14 + $0x14] ss:$8 sps:$4 sm:$0xff]  }
 0xec5   :  { %v2764_v7 = vld [vmem:[#allocation14 + $0x10] ss:$8 sps:$4 sm:$0xff]  }
 0xed4   :  { %1589 = vrot.lane.b32.xlu1 %v3561_v59, %s3729_s30 }
 0xed8   :  { %1682 = vrot.lane.b32.xlu1 %v3522_v35, %s3090_s8 }
 0xf50   :  { %v1579_v36 = vpop.xlane.xlu1 %1578 }
 0xf51   :  { %v1580_v8 = vsub.f32 %v1571_v12, %v1579_v36  ;;  %v2769_v36 = vld [vmem:[#allocation14 + $0x24] ss:$8 sps:$4 sm:$0xff]  }
 0xf53   :  { %v1581_v9 = vmul.f32 1.442695, %v1580_v8  ;;  %v2767_v8 = vld [vmem:[#allocation14 + $0x20] ss:$8 sps:$4 sm:$0xff]  }
 0xf54   :  { %v1590_v10 = vpop.permute.xlu1 %1589 }
 0xf55   :  { %2825 = vpow2.f32 %v1581_v9  ;;  %v1595_v11 = vsel %vm597_vm3, %v1590_v10, 0 }
 0xf56   :  { %2677 = vmatpush3.bf16.msra.mxu1 %v1595_v11 }
 0xf57   :  { %2690 = vmatprep.subr.bf16.mxu1 %v3087_v0 }
 0xf58   :  { %v1683_v20 = vpop.permute.xlu1 %1682 }
 0xf5f   :  { %v2826_v13 = vpop.eup %2825 }
 0xf60   :  { %v1583_v14 = vsel %vm581_vm2, %v2826_v13, 0.0 }
 0xf61   :  { %1584 = vadd.xlane.f32.xlu0 %v1583_v14  ;;  %v2772_v14 = vld [vmem:[#allocation14 + $0x34] ss:$8 sps:$4 sm:$0xff]  }
 0xf77   :  { %1684 = vrot.lane.b32.xlu0 %v3516_v32, %s3090_s8 }
 0xfee   :  { %v1585_v15 = vpop.xlane.xlu0 %1584 }
 0xfef   :  { %2827 = vrcp.f32 %v1585_v15  ;;  %v2770_v15 = vld [vmem:[#allocation14 + $0x30] ss:$8 sps:$4 sm:$0xff]  }
 0xff2   :  { %v1685_v17 = vpop.permute.xlu0 %1684 }
 0xff3   :  { %v1690_v30 = vsel %vm534_vm1, %v1685_v17, 0  ;;  %v2778_v17 = vld [vmem:[#allocation14 + $0x54] ss:$8 sps:$4 sm:$0xff]  }
 0xff9   :  { %v2828_v35 = vpop.eup %2827 }
 0xffa   :  { %v1587_v16 = vmul.f32 %v2828_v35, %v2826_v13  ;;  %v2775_v35 = vld [vmem:[#allocation14 + $0x44] ss:$8 sps:$4 sm:$0xff]  }
 0xffc   :  { %v1588_v18 = vpack.c.bf16 %v1587_v16, %v1587_v16  ;;  %v2773_v16 = vld [vmem:[#allocation14 + $0x40] ss:$8 sps:$4 sm:$0xff]  }
 0xffe   :  { %2679 = vmatmul.mubr.msk.bf16.vlgmr.msra.gmra.mrb[48].mxu1 %vm581_vm2, %v1588_v18  ;;  %v2776_v18 = vld [vmem:[#allocation14 + $0x50] ss:$8 sps:$4 sm:$0xff]  }
 0xfff   :  { %2691 = vmatpush3.bf16.xpose.msra.mxu1 %v1690_v30  ;;  %2692 = vmatprep.mubr.msk.bf16.mxu1 %vm3088_vm0, %v3087_v0  ;;  %v2781_v30 = vld [vmem:[#allocation14 + $0x64] ss:$8 sps:$4 sm:$0xff]  }
0x1000   :  { %2702 = vmatprep.subr.bf16.mxu1 %v3087_v0 }
0x1006   :  { %2693 = vmatmul.mubr.msk.bf16.vlgmr.msra.gmra.mrb[52].mxu1 %vm534_vm1, %v1683_v20  ;;  %v2779_v20 = vld [vmem:[#allocation14 + $0x60] ss:$8 sps:$4 sm:$0xff]  }
0x1007   :  { %2703 = vmatpush3.bf16.msra.mxu1 %v3529_v45  ;;  %2706 = vmatprep.mubr.msk.bf16.mxu1 %vm3088_vm0, %v3087_v0 }
0x1008   :  { %2704 = vmatprep.subr.bf16.mxu1 %v3087_v0 }
0x100b   :  { %2705 = vmatpush3.bf16.msra.mxu1 %v3535_v48 }
0x10d1   :  { %v1631_v32 = vpop.f32.mrb[48].mxu1 }
0x10d2   :  { %v1637_v21 = vpack.c.bf16 %v1631_v32, %v1631_v32  ;;  %v2680_v22 = vpop.f32.mrb[49].mxu1  ;;  %v2784_v32 = vld [vmem:[#allocation14 + $0x74] ss:$8 sps:$4 sm:$0xff]  }
0x10d3   :  { %v1634_v23 = vpop.f32.mrb[50].mxu1  ;;  %v3091_v22 = vmov 0  }
0x10d4   :  { %v2681_v25 = vpop.f32.mrb[51].mxu1  ;;  %2687 = vmatmul.mubr.msk.bf16.vlgmr.msra.gmra.mrb[40].mxu0 %vm534_vm1, %v1637_v21  ;;  %v2782_v21 = vld [vmem:[#allocation14 + $0x70] ss:$8 sps:$4 sm:$0xff]   ;;  %v2785_v23 = vld [vmem:[#allocation16 + $0x40] sm:$0xff]  }
0x10d5   :  { %2698 = vmatprep.mubr.msk.bf16.mxu0 %vm3088_vm0, %v3087_v0  ;;  %v2347_v0 = vld [vmem:[%s3696_s10] ss:$0 sm:$0xff]  ;;  %v2786_v25 = vld [vmem:[#allocation16] sm:$0xff]   ;;  %2468 = vmatprep.subr.bf16.mxu1 %v2785_v23 }
0x10d6   :  { %v1844_v31 = vadd.f32 %v2347_v0, %v3580_v24 }
0x10d9   :  { %v1726_v26 = vpop.f32.mrb[52].mxu1 }
0x10da   :  { %v2694_v27 = vpop.f32.mrb[53].mxu1  ;;  %v1732_v45 = vsel %vm581_vm2, %v1726_v26, -inf }
0x10db   :  { %1733 = vmax.xlane.f32.xlu1 %v1732_v45  ;;  %v1729_v28 = vpop.f32.mrb[54].mxu1  ;;  %v2788_v27 = vld [vmem:[#allocation16 + $0x8] sm:$0xff]   ;;  %v2789_v45 = vld [vmem:[#allocation16 + $0x50] sm:$0xff]  }
0x10dc   :  { %v2695_v29 = vpop.f32.mrb[55].mxu1  ;;  %v2790_v28 = vld [vmem:[#allocation16 + $0x10] sm:$0xff]  }
0x10dd   :  { %v2791_v29 = vld [vmem:[#allocation16 + $0x58] sm:$0xff]  }
0x10ec   :  { %1744 = vrot.lane.b32.xlu1 %v3561_v59, %s3090_s8  ;;  %v1846_v59 = vadd.f32 %v1844_v31, %v3374_v19 }
0x1168   :  { %v1734_v48 = vpop.xlane.xlu1 %1733 }
0x1169   :  { %v1735_v37 = vsub.f32 %v1726_v26, %v1734_v48  ;;  %v2787_v26 = vld [vmem:[#allocation16 + $0x48] sm:$0xff]   ;;  %v2792_v48 = vld [vmem:[#allocation16 + $0x18] sm:$0xff]  }
0x116b   :  { %v1736_v39 = vmul.f32 1.442695, %v1735_v37  ;;  %v2793_v37 = vld [vmem:[#allocation16 + $0x60] sm:$0xff]  }
0x116c   :  { %v1745_v41 = vpop.permute.xlu1 %1744 }
0x116d   :  { %2829 = vpow2.f32 %v1736_v39  ;;  %v1750_v43 = vsel %vm597_vm3, %v1745_v41, 0  ;;  %v2794_v39 = vld [vmem:[#allocation16 + $0x20] sm:$0xff]   ;;  %v2795_v41 = vld [vmem:[#allocation16 + $0x68] sm:$0xff]  }
0x116e   :  { %2697 = vmatpush3.bf16.msra.mxu0 %v1750_v43 }
0x116f   :  { %1998 = vmatprep.subr.bf16.mxu0 %v2763_v4 }
0x1177   :  { %v2830_v3 = vpop.eup %2829 }
0x1178   :  { %v1738_v44 = vsel %vm581_vm2, %v2830_v3, 0.0 }
0x1179   :  { %1739 = vadd.xlane.f32.xlu0 %v1738_v44 }
0x117d   :  { %1850 = vadd.xlane.f32.xlu0 %v1846_v59 }
0x11a7   :  { %v1675_v38 = vpop.f32.mrb[40].mxu0 }
0x11a8   :  { %v1681_v46 = vadd.f32 %v1675_v38, %v3609_v1  ;;  %v2688_v47 = vpop.f32.mrb[41].mxu0 }
0x11a9   :  { %v1678_v49 = vpop.f32.mrb[42].mxu0  ;;  %v2348_v47 = vld [vmem:[%s3697_s11] ss:$0 sm:$0xff] }
0x11aa   :  { %v2689_v50 = vpop.f32.mrb[43].mxu0 }
0x1206   :  { %v1740_v51 = vpop.xlane.xlu0 %1739 }
0x1207   :  { %2831 = vrcp.f32 %v1740_v51 }
0x120a   :  { %v1851_v19 = vpop.xlane.xlu0 %1850 }
0x120b   :  { %v1855_v58 = vmul.f32 0.0078125, %v1851_v19  ;;  %v2799_v19 = vld [vmem:[#allocation16 + $0x78] sm:$0xff]  }
0x120d   :  { %v3648_v33 = vsub.f32 %v1846_v59, %v1855_v58  ;;  %v1908_v58 = vlaneseq }
0x120f   :  { %v1859_v12 = vmul.f32 %v3648_v33, %v3648_v33 }
0x1211   :  { %v2832_v40 = vpop.eup %2831 }
0x1212   :  { %v1742_v52 = vmul.f32 %v2832_v40, %v2830_v3  ;;  %v2349_v40 = vld [vmem:[%s3698_s12] ss:$0 sm:$0xff] }
0x1214   :  { %v1743_v53 = vpack.c.bf16 %v1742_v52, %v1742_v52 }
0x1216   :  { %2699 = vmatmul.mubr.msk.bf16.vlgmr.msra.gmra.mrb[44].mxu0 %vm581_vm2, %v1743_v53 }
0x1217   :  { %1999 = vmatpush1.bf16.msra.mxu0 %v2761_v5  ;;  %2030 = vmatprep.mubr.bf16.mxu0 %v3091_v22 }
0x1218   :  { %2000 = vmatprep.subr.bf16.mxu0 %v2766_v6 }
0x121b   :  { %2001 = vmatpush1.bf16.msra.mxu0 %v2764_v7 }
0x121c   :  { %2002 = vmatprep.subr.bf16.mxu0 %v2769_v36 }
0x121f   :  { %2003 = vmatpush1.bf16.msra.mxu0 %v2767_v8 }
0x1220   :  { %2004 = vmatprep.subr.bf16.mxu0 %v2772_v14 }
0x1223   :  { %2005 = vmatpush1.bf16.msra.mxu0 %v2770_v15 }
0x1224   :  { %2006 = vmatprep.subr.bf16.mxu0 %v2775_v35  ;;  %v2366_v35 = vld [vmem:[%s3702_s16] ss:$0 sm:$0xff] }
0x1227   :  { %2007 = vmatpush1.bf16.msra.mxu0 %v2773_v16 }
0x1228   :  { %2008 = vmatprep.subr.bf16.mxu0 %v2778_v17 }
0x122b   :  { %2009 = vmatpush1.bf16.msra.mxu0 %v2776_v18 }
0x122c   :  { %2010 = vmatprep.subr.bf16.mxu0 %v2781_v30 }
0x122f   :  { %2011 = vmatpush1.bf16.msra.mxu0 %v2779_v20 }
0x1230   :  { %2012 = vmatprep.subr.bf16.mxu0 %v2784_v32 }
0x1233   :  { %2013 = vmatpush1.bf16.msra.mxu0 %v2782_v21 }
0x12e9   :  { %v1786_v24 = vpop.f32.mrb[44].mxu0 }
0x12ea   :  { %v1792_v54 = vpack.c.bf16 %v1786_v24, %v1786_v24  ;;  %v2700_v55 = vpop.f32.mrb[45].mxu0 }
0x12eb   :  { %v1789_v56 = vpop.f32.mrb[46].mxu0  ;;  %v2796_v55 = vld [vmem:[#allocation16 + $0x28] sm:$0xff]  }
0x12ec   :  { %v2701_v42 = vpop.f32.mrb[47].mxu0  ;;  %2707 = vmatmul.mubr.msk.bf16.vlgmr.msra.gmra.mrb[56].mxu1 %vm534_vm1, %v1792_v54  ;;  %v2797_v56 = vld [vmem:[#allocation16 + $0x70] sm:$0xff]  }
0x12ed   :  { %2469 = vmatpush3.bf16.msra.mxu1 %v2786_v25  ;;  %v2798_v42 = vld [vmem:[#allocation16 + $0x30] sm:$0xff]  }
0x12ee   :  { %2470 = vmatprep.subr.bf16.mxu1 %v2787_v26 }
0x12f1   :  { %2471 = vmatpush3.bf16.msra.mxu1 %v2788_v27 }
0x12f2   :  { %2472 = vmatprep.subr.bf16.mxu1 %v2789_v45 }
0x12f5   :  { %2473 = vmatpush3.bf16.msra.mxu1 %v2790_v28 }
0x12f6   :  { %2474 = vmatprep.subr.bf16.mxu1 %v2791_v29 }
0x12f9   :  { %2475 = vmatpush3.bf16.msra.mxu1 %v2792_v48 }
0x12fa   :  { %2476 = vmatprep.subr.bf16.mxu1 %v2793_v37 }
0x12fd   :  { %2477 = vmatpush3.bf16.msra.mxu1 %v2794_v39 }
0x12fe   :  { %2478 = vmatprep.subr.bf16.mxu1 %v2795_v41 }
0x1301   :  { %2479 = vmatpush3.bf16.msra.mxu1 %v2796_v55 }
0x1302   :  { %2480 = vmatprep.subr.bf16.mxu1 %v2797_v56 }
0x1305   :  { %2481 = vmatpush3.bf16.msra.mxu1 %v2798_v42 }
0x1306   :  { %2482 = vmatprep.subr.bf16.mxu1 %v2799_v19 }
0x13bf   :  { %v1830_v57 = vpop.f32.mrb[56].mxu1 }
0x13c0   :  { %v1836_v60 = vadd.f32 %v1830_v57, %v1681_v46  ;;  %v2708_v61 = vpop.f32.mrb[57].mxu1  ;;  %v2800_v57 = vld [vmem:[#allocation16 + $0x38] sm:$0xff]  }
0x13c1   :  { %v1833_v62 = vpop.f32.mrb[58].mxu1  ;;  %2483 = vmatpush3.bf16.msra.mxu1 %v2800_v57 }
0x13c2   :  { %v1845_v63 = vadd.f32 %v2347_v0, %v1836_v60  ;;  %v2709_v1 = vpop.f32.mrb[59].mxu1  ;;  %v1909_v60 = vshrl.u32 %v1908_v58, 7  ;;  %v1906_v62 = vld [vmem:[%s3700_s14] sm:$0x3] }
0x13c4   :  { %v1847_v2 = vadd.f32 %v2841_v34, %v1845_v63  ;;  %v1910_v61 = vsub.s32 0, %v1909_v60  ;;  %v1914_v63 = vsub.s32 1, %v1909_v60 }
0x13c6   :  { %1852 = vadd.xlane.f32.xlu0 %v1847_v2  ;;  %v1911_v1 = vrot.slane %v1906_v62, %v1910_v61 }
0x13ca   :  { %1861 = vadd.xlane.f32.xlu0 %v1859_v12 }
0x1453   :  { %v1853_v9 = vpop.xlane.xlu0 %1852 }
0x1454   :  { %v1856_v10 = vmul.f32 0.0078125, %v1853_v9 }
0x1456   :  { %v1858_v11 = vsub.f32 %v1847_v2, %v1856_v10 }
0x1457   :  { %v1862_v43 = vpop.xlane.xlu0 %1861 }
0x1458   :  { %v1860_v13 = vmul.f32 %v1858_v11, %v1858_v11  ;;  %v1865_v0 = vmul.f32 0.0078125, %v1862_v43 }
0x145a   :  { %1863 = vadd.xlane.f32.xlu1 %v1860_v13  ;;  %v1867_v3 = vadd.f32 1e-05, %v1865_v0 }
0x145c   :  { %2833 = vrsqrt.f32 %v1867_v3 }
0x1466   :  { %v2834_v38 = vpop.eup %2833 }
0x1467   :  { %v1871_v46 = vmul.f32 %v2834_v38, %v3648_v33  ;;  %v1915_v33 = vrot.slane %v1906_v62, %v1914_v63 }
0x1469   :  { %v1879_v51 = vmul.f32 %v2348_v47, %v1871_v46  ;;  %v2384_v46 = vld [vmem:[%s3730_s3] ss:$0 sm:$0xff] }
0x146b   :  { %v1887_v53 = vadd.f32 %v2349_v40, %v1879_v51 }
0x14e7   :  { %v1864_v31 = vpop.xlane.xlu1 %1863 }
0x14e8   :  { %v1866_v44 = vmul.f32 0.0078125, %v1864_v31 }
0x14ea   :  { %v1868_v59 = vadd.f32 1e-05, %v1866_v44 }
0x14ec   :  { %2835 = vrsqrt.f32 %v1868_v59  ;;  %v2383_v59 = vld [vmem:[%s3703_s17] ss:$0 sm:$0xff] }
0x14f6   :  { %v2836_v49 = vpop.eup %2835 }
0x14f7   :  { %v1872_v50 = vmul.f32 %v2836_v49, %v1858_v11 }
0x14f9   :  { %v1880_v52 = vmul.f32 %v2348_v47, %v1872_v50 }
0x14fb   :  { %v1888_v24 = vadd.f32 %v2349_v40, %v1880_v52 }
0x14fd   :  { %v1889_v54 = vpack.c.bf16 %v1888_v24, %v1887_v53 }
0x14ff   :  { %2031 = vmatmul.mubr.bf16.vlgmr.msra.gmra.mrb[48].mxu0 %v1889_v54 }
0x15d2   :  { %v2032_v34 = vpop.f32.mrb[48].mxu0 }
0x15d3   :  { %v2033_v2 = vadd.f32 %v2032_v34, %v1911_v1  ;;  %v2034_v12 = vpop.f32.mrb[49].mxu0 }
0x15d4   :  { %v2035_v5 = vadd.f32 %v2034_v12, %v1915_v33  ;;  %v2036_v4 = vpop.f32.mrb[50].mxu0 }
0x15d5   :  { %v2037_v6 = vadd.f32 %v2036_v4, %v1911_v1  ;;  %v2038_v7 = vpop.f32.mrb[51].mxu0  ;;  %v2041_v8 = vmax.f32 %v2033_v2, 0.0 }
0x15d6   :  { %v2039_v36 = vadd.f32 %v2038_v7, %v1915_v33  ;;  %v2042_v10 = vmax.f32 %v2035_v5, 0.0 }
0x15d7   :  { %v2043_v9 = vmax.f32 %v2037_v6, 0.0 }
0x15d8   :  { %v2044_v11 = vmax.f32 %v2039_v36, 0.0 }
0x15d9   :  { %v2045_v13 = vpack.c.bf16 %v2043_v9, %v2041_v8 }
0x15da   :  { %v2046_v14 = vpack.c.bf16 %v2044_v11, %v2042_v10 }
0x15dc   :  { %2214 = vmatprep.mubr.bf16.mxu1 %v2046_v14 }
0x15dd   :  { %2215 = vmatmul.mubr.bf16.vlgmr.msra.gmra.mrb[60].mxu1 %v2045_v13 }
0x16b0   :  { %v2484_v15 = vpop.f32.mrb[60].mxu1 }
0x16b1   :  { %v2485_v16 = vpop.f32.mrb[61].mxu1 }
0x16b2   :  { %v2486_v17 = vadd.f32 %v2485_v16, %v2484_v15  ;;  %v2487_v18 = vpop.f32.mrb[62].mxu1 }
0x16b3   :  { %v2488_v30 = vpop.f32.mrb[63].mxu1 }
0x16b4   :  { %v2217_v20 = vadd.f32 %v2486_v17, %v2366_v35  ;;  %v2489_v32 = vadd.f32 %v2488_v30, %v2487_v18 }
0x16b6   :  { %v2220_v21 = vadd.f32 %v2489_v32, %v2366_v35  ;;  %v2223_v22 = vadd.f32 %v2217_v20, %v1887_v53 }
0x16b8   :  { %2227 = vadd.xlane.f32.xlu0 %v2223_v22  ;;  %v2224_v23 = vadd.f32 %v2220_v21, %v1888_v24 }
0x16bc   :  { %2229 = vadd.xlane.f32.xlu0 %v2224_v23 }
0x1745   :  { %v2228_v25 = vpop.xlane.xlu0 %2227 }
0x1746   :  { %v2231_v26 = vmul.f32 0.0078125, %v2228_v25 }
0x1748   :  { %v2233_v27 = vsub.f32 %v2223_v22, %v2231_v26 }
0x1749   :  { %v2230_v45 = vpop.xlane.xlu0 %2229 }
0x174a   :  { %v2232_v28 = vmul.f32 0.0078125, %v2230_v45  ;;  %v2235_v29 = vmul.f32 %v2233_v27, %v2233_v27 }
0x174c   :  { %v2234_v48 = vsub.f32 %v2224_v23, %v2232_v28  ;;  %2237 = vadd.xlane.f32.xlu0 %v2235_v29 }
0x174e   :  { %v2236_v37 = vmul.f32 %v2234_v48, %v2234_v48 }
0x1750   :  { %2239 = vadd.xlane.f32.xlu0 %v2236_v37 }
0x17d9   :  { %v2238_v39 = vpop.xlane.xlu0 %2237 }
0x17da   :  { %v2241_v41 = vmul.f32 0.0078125, %v2238_v39 }
0x17dc   :  { %v2243_v43 = vadd.f32 1e-05, %v2241_v41 }
0x17dd   :  { %v2240_v0 = vpop.xlane.xlu0 %2239 }
0x17de   :  { %2837 = vrsqrt.f32 %v2243_v43  ;;  %v2242_v3 = vmul.f32 0.0078125, %v2240_v0 }
0x17e0   :  { %v2244_v31 = vadd.f32 1e-05, %v2242_v3 }
0x17e2   :  { %2839 = vrsqrt.f32 %v2244_v31 }
0x17e8   :  { %v2838_v44 = vpop.eup %2837 }
0x17e9   :  { %v2247_v38 = vmul.f32 %v2838_v44, %v2233_v27 }
0x17eb   :  { %v2255_v47 = vmul.f32 %v2383_v59, %v2247_v38 }
0x17ec   :  { %v2840_v49 = vpop.eup %2839 }
0x17ed   :  { %v2248_v50 = vmul.f32 %v2840_v49, %v2234_v48  ;;  %v2263_v51 = vadd.f32 %v2384_v46, %v2255_v47 }
0x17ef   :  { %v2256_v40 = vmul.f32 %v2383_v59, %v2248_v50  ;;  %2265 = vst [vmem:[#allocation17] sm:$0xff] %v2263_v51 }
0x17f1   :  { %v2264_v52 = vadd.f32 %v2384_v46, %v2256_v40 }
0x17f3   :  { %2266 = vst [vmem:[#allocation17 + $0x8] sm:$0xff] %v2264_v52 }
0x17f4   :  { %3051 = shalt.err (!%p3048_p6)
}
0x17f5   :  { %s3731_s26 = sld [smem:[#allocation29_spill]] }
0x17fb   :  { %s3052_s15 = scalar_lea.hbm %s3731_s26, 256 }
0x17fc   :  { %p3053_p7 = scmp.ne.s32.totalorder %s3731_s26, %s3052_s15  ;;  %p3056_p8 = scmp.lt.u32.totalorder %s3052_s15, %s3731_s26 }
0x17fe   :  { %p3058_p9 = pnand %p3056_p8, %p3053_p7 }
0x1800   :  { %3061 = shalt.err (!%p3058_p9)
}
0x1801   :  { %2278 = dma.vmem_to_hbm [thread:$0]  %s2273_s27, 256, %s3731_s26, [#allocation4], %s3726_s22, %s3726_s22, %s3725_s7  }
0x1802   :  { %3072 = dma.done.wait [#allocation4], 256  }
0x1803   :  { %3073 = vsyncadd [#allocation4], 4294967040 }
0x1804   :  { %2282 = vsyncpa [#allocation3], 1 }
0x1805   :  { %2283 = vsyncpa [#allocation6], 1 }
0x1806   :  { %2284 = vsyncpa [#allocation9], 1 }
0x1807   :  { %2285 = vsyncpa [#allocation12], 1 }
0x1808   :  { %2286 = vsyncpa [#allocation15], 1 }
0x1809   :  { %2287 = vsyncpa [#allocation4], 1 }

</bundles_post_ra>
